<compile_context>
chip_gen: v7x
topology: tpu7x:2x2x1
jax: 0.10.0
libtpu: 0.0.40
codegen_flags: <defaults>
</compile_context>

<pallas_src>
import functools

import jax
import jax.numpy as jnp
from jax import lax
from jax.experimental import pallas as pl
from jax.experimental.pallas import tpu as pltpu


# ----------------------------- Pallas kernel --------------------------------

def _decoder_block_kernel(x_ref, mup_ref, bup_ref, *rest, num_layers):
    """One batch element per grid step; all activations stay on-chip."""
    out_ref = rest[-1]
    layer_refs = rest[:-1]                       # (mc_ref, bias_ref) per conv layer

    H = x_ref.shape[1]

    # ConvTranspose2d(k=2, s=2): even / odd fine rows come straight out of two matmuls
    # (the 2x2 sub-pixel scatter along W is folded into mup's block structure).
    x = x_ref[0]                                                           # (H, W*Cin)
    a0 = jnp.dot(x, mup_ref[0], preferred_element_type=jnp.float32) + bup_ref[...]
    a1 = jnp.dot(x, mup_ref[1], preferred_element_type=jnp.float32) + bup_ref[...]

    # Exact 0/1 row-shift matrices (applied on the left):
    #   dn @ A -> row above (zero row at the top), up @ A -> row below (zero at the bottom).
    row = lax.broadcasted_iota(jnp.int32, (H, H), 0)
    col = lax.broadcasted_iota(jnp.int32, (H, H), 1)
    dn = (col == row - 1).astype(jnp.float32)
    up = (col == row + 1).astype(jnp.float32)

    for l in range(num_layers):
        mc_ref = layer_refs[2 * l]
        b_row = layer_refs[2 * l + 1][...]
        # DecoderLayer: ReLU ...
        a0 = jnp.maximum(a0, 0.0)
        a1 = jnp.maximum(a1, 0.0)
        # ... then Conv2d(3x3, stride=1, padding=1) as 3 row-tap matmuls per output-row
        # parity (W taps + zero padding along W are folded into mc's block structure).
        a1_prev = jnp.dot(dn, a1, preferred_element_type=jnp.float32)      # fine row p-1 (even p)
        a0_next = jnp.dot(up, a0, preferred_element_type=jnp.float32)      # fine row p+1 (odd p)
        o0 = (jnp.dot(a1_prev, mc_ref[0], preferred_element_type=jnp.float32)
              + jnp.dot(a0,     mc_ref[1], preferred_element_type=jnp.float32)
              + jnp.dot(a1,     mc_ref[2], preferred_element_type=jnp.float32) + b_row)
        o1 = (jnp.dot(a0,      mc_ref[0], preferred_element_type=jnp.float32)
              + jnp.dot(a1,     mc_ref[1], preferred_element_type=jnp.float32)
              + jnp.dot(a0_next, mc_ref[2], preferred_element_type=jnp.float32) + b_row)
        a0, a1 = o0, o1

    out_ref[0, 0, :, :] = a0        # even fine rows
    out_ref[0, 1, :, :] = a1        # odd fine rows


# ------------------------- weight-matrix construction ------------------------

def _upsample_matrices(wt, bt, W):
    """ConvTranspose2d(k=2,s=2) as two matmuls on the (H, W*Cin) input slab.

    mup[di][j*Cin+ci, (2j+dj)*Cout + co] = wt[ci, co, di, dj]
    """
    Cin, Cout = wt.shape[0], wt.shape[1]
    W2 = 2 * W
    dj = jnp.arange(2)
    j = jnp.arange(W)
    q = jnp.arange(W2)
    sel = (q[None, None, :] == (2 * j[None, :, None] + dj[:, None, None])
           ).astype(jnp.float32)                                   # (2, W, W2)
    t = jnp.einsum("djq,icad->ajiqc", sel, wt.astype(jnp.float32))  # (2, W, Cin, W2, Cout)
    mup = t.reshape(2, W * Cin, W2 * Cout)
    bup = jnp.tile(bt.astype(jnp.float32), W2).reshape(1, W2 * Cout)
    return mup, bup


def _conv3x3_matrices(w, b, W2):
    """Conv2d(3x3, pad=1) on a (rows, W2*Cin) slab as 3 row-tap matmuls.

    mc[u][p*Cin+ci, q*Cout+co] = w[co, ci, u, v]  with p = q + v - 1
    (out-of-range p == zero padding along W).
    """
    Cout, Cin = w.shape[0], w.shape[1]
    sel = jnp.stack([jnp.eye(W2, k=1 - v, dtype=jnp.float32) for v in range(3)],
                    axis=0)                                         # (3, W2, W2)
    t = jnp.einsum("vpq,oiuv->upiqo", sel, w.astype(jnp.float32))   # (3, W2, Cin, W2, Cout)
    mc = t.reshape(3, W2 * Cin, W2 * Cout)
    brow = jnp.tile(b.astype(jnp.float32), W2).reshape(1, W2 * Cout)
    return mc, brow


# ------------------------------ fused forward --------------------------------

@jax.jit
def decoder_block_forward(x, params):
    """DecoderBlock(input_dim, hidden_dim, output_dim, layers, enable_bn=False, padding=1)."""
    (wt, bt), conv_params = params
    N, Cin, H, W = x.shape
    H2, W2 = 2 * H, 2 * W

    # Input glue: NCHW -> (N, H, W*Cin)  (the only input-side layout pass).
    xr = jnp.transpose(x, (0, 2, 3, 1)).reshape(N, H, W * Cin).astype(jnp.float32)

    mup, bup = _upsample_matrices(wt, bt, W)
    inputs = [xr, mup, bup]
    in_specs = [
        pl.BlockSpec((1, H, W * Cin), lambda n: (n, 0, 0)),
        pl.BlockSpec(mup.shape, lambda n: (0, 0, 0)),
        pl.BlockSpec(bup.shape, lambda n: (0, 0)),
    ]
    c_prev = wt.shape[1]
    for (w, b) in conv_params:
        mc, brow = _conv3x3_matrices(w, b, W2)
        inputs += [mc, brow]
        in_specs += [
            pl.BlockSpec(mc.shape, lambda n: (0, 0, 0)),
            pl.BlockSpec(brow.shape, lambda n: (0, 0)),
        ]
        c_prev = w.shape[0]
    Cout = c_prev

    out = pl.pallas_call(
        functools.partial(_decoder_block_kernel, num_layers=len(conv_params)),
        out_shape=jax.ShapeDtypeStruct((N, 2, H, W2 * Cout), jnp.float32),
        grid_spec=pltpu.PrefetchScalarGridSpec(
            num_scalar_prefetch=0,
            grid=(N,),
            in_specs=in_specs,
            out_specs=pl.BlockSpec((1, 2, H, W2 * Cout), lambda n: (n, 0, 0, 0)),
        ),
        compiler_params=pltpu.CompilerParams(dimension_semantics=("parallel",)),
    )(*inputs)

    # Output glue: (N, parity, H, W2*Cout) -> NCHW (N, Cout, 2H, 2W) (one pass).
    y = out.reshape(N, 2, H, W2, Cout)
    return jnp.transpose(y, (0, 4, 2, 1, 3)).reshape(N, Cout, H2, W2)


# ------------------------------ Pure-JAX reference ---------------------------

def ref_forward(x, params):
    (wt, bt), conv_params = params
    N, C, H, W = x.shape
    Cout = wt.shape[1]
    y = jnp.einsum("nchw,copq->nohpwq", x, wt).reshape(N, Cout, 2 * H, 2 * W)
    y = y + bt[None, :, None, None]
    for (w, b) in conv_params:
        y = jnp.maximum(y, 0.0)
        y = lax.conv_general_dilated(
            y, w, window_strides=(1, 1), padding=((1, 1), (1, 1)),
            dimension_numbers=("NCHW", "OIHW", "NCHW"),
        ) + b[None, :, None, None]
    return y


# ----------------------------------- Main ------------------------------------

if __name__ == "__main__":
    # DecoderBlock(input_dim=4, hidden_dim=4, output_dim=8, layers=2, enable_bn=False)
    # (the module wires the first DecoderLayer with in_channels=input_dim, so input_dim
    #  must equal hidden_dim for the forward to be well-typed, as in the original usage)
    N, Cin, H, W = 2, 4, 16, 16
    hidden, out_dim = 4, 8

    key = jax.random.PRNGKey(0)
    ks = jax.random.split(key, 7)
    x = jax.random.normal(ks[0], (N, Cin, H, W), jnp.float32)

    # ConvTranspose2d(Cin, hidden, k=2, s=2): weight (Cin, hidden, 2, 2), bias (hidden,)
    wt = 0.1 * jax.random.normal(ks[1], (Cin, hidden, 2, 2), jnp.float32)
    bt = 0.1 * jax.random.normal(ks[2], (hidden,), jnp.float32)
    # DecoderLayer 1: Conv2d(Cin -> hidden, 3x3)
    w1 = 0.1 * jax.random.normal(ks[3], (hidden, Cin, 3, 3), jnp.float32)
    b1 = 0.1 * jax.random.normal(ks[4], (hidden,), jnp.float32)
    # DecoderLayer 2 (last): Conv2d(hidden -> out_dim, 3x3)
    w2 = 0.1 * jax.random.normal(ks[5], (out_dim, hidden, 3, 3), jnp.float32)
    b2 = 0.1 * jax.random.normal(ks[6], (out_dim,), jnp.float32)

    params = ((wt, bt), [(w1, b1), (w2, b2)])

    y = jax.block_until_ready(decoder_block_forward(x, params))
    y_ref = jax.block_until_ready(ref_forward(x, params))

    assert y.shape == (N, out_dim, 2 * H, 2 * W), y.shape
    assert jnp.allclose(y, y_ref, atol=1e-4, rtol=1e-4), float(jnp.max(jnp.abs(y - y_ref)))
    print("KERNEL_OK")
</pallas_src>

<mosaic_0001>
module attributes {stable_mosaic.version = 11 : i64} {
  func.func @_decoder_block_kernel(%arg0: i32, %arg1: memref<1x16x64xf32, #tpu.memory_space<vmem>>, %arg2: memref<2x64x128xf32, #tpu.memory_space<vmem>>, %arg3: memref<1x128xf32, #tpu.memory_space<vmem>>, %arg4: memref<3x128x128xf32, #tpu.memory_space<vmem>>, %arg5: memref<1x128xf32, #tpu.memory_space<vmem>>, %arg6: memref<3x128x256xf32, #tpu.memory_space<vmem>>, %arg7: memref<1x256xf32, #tpu.memory_space<vmem>>, %arg8: memref<1x2x16x256xf32, #tpu.memory_space<vmem>>) attributes {dimension_semantics = [#tpu.dimension_semantics<parallel>], iteration_bounds = array<i64: 2>, scalar_prefetch = 0 : i64, scratch_operands = 0 : i64, tpu.core_type = #tpu.core_type<tc>, window_params = [{transform_indices = @transform_0, window_bounds = array<i64: 1, 16, 64>}, {pipeline_mode = #tpu.pipeline_mode<synchronous>, transform_indices = @transform_1, window_bounds = array<i64: 2, 64, 128>}, {pipeline_mode = #tpu.pipeline_mode<synchronous>, transform_indices = @transform_2, window_bounds = array<i64: 1, 128>}, {pipeline_mode = #tpu.pipeline_mode<synchronous>, transform_indices = @transform_3, window_bounds = array<i64: 3, 128, 128>}, {pipeline_mode = #tpu.pipeline_mode<synchronous>, transform_indices = @transform_4, window_bounds = array<i64: 1, 128>}, {pipeline_mode = #tpu.pipeline_mode<synchronous>, transform_indices = @transform_5, window_bounds = array<i64: 3, 128, 256>}, {pipeline_mode = #tpu.pipeline_mode<synchronous>, transform_indices = @transform_6, window_bounds = array<i64: 1, 256>}, {transform_indices = @transform_7, window_bounds = array<i64: 1, 2, 16, 256>}]} {
    %c0 = arith.constant 0 : index
    %c0_0 = arith.constant 0 : index
    %c0_1 = arith.constant 0 : index
    %0 = vector.load %arg1[%c0, %c0_0, %c0_1] : memref<1x16x64xf32, #tpu.memory_space<vmem>>, vector<1x16x64xf32>
    %1 = vector.shape_cast %0 : vector<1x16x64xf32> to vector<16x64xf32>
    %c0_2 = arith.constant 0 : index
    %c0_3 = arith.constant 0 : index
    %c0_4 = arith.constant 0 : index
    %2 = vector.load %arg2[%c0_2, %c0_3, %c0_4] : memref<2x64x128xf32, #tpu.memory_space<vmem>>, vector<1x64x128xf32>
    %3 = vector.shape_cast %2 : vector<1x64x128xf32> to vector<64x128xf32>
    %cst = arith.constant dense<0.000000e+00> : vector<16x128xf32>
    %4 = tpu.matmul %1, %3, %cst {dimension_numbers = #tpu.dot_dimension_numbers<[1], [0], [0], [1], [0, 0, 1, 1], [], []>} : vector<16x64xf32>, vector<64x128xf32>, vector<16x128xf32> -> vector<16x128xf32>
    %c0_5 = arith.constant 0 : index
    %c0_6 = arith.constant 0 : index
    %5 = vector.load %arg3[%c0_5, %c0_6] : memref<1x128xf32, #tpu.memory_space<vmem>>, vector<1x128xf32>
    %6 = vector.broadcast %5 : vector<1x128xf32> to vector<16x128xf32>
    %7 = arith.addf %4, %6 : vector<16x128xf32>
    %c1 = arith.constant 1 : index
    %c0_7 = arith.constant 0 : index
    %c0_8 = arith.constant 0 : index
    %8 = vector.load %arg2[%c1, %c0_7, %c0_8] : memref<2x64x128xf32, #tpu.memory_space<vmem>>, vector<1x64x128xf32>
    %9 = vector.shape_cast %8 : vector<1x64x128xf32> to vector<64x128xf32>
    %cst_9 = arith.constant dense<0.000000e+00> : vector<16x128xf32>
    %10 = tpu.matmul %1, %9, %cst_9 {dimension_numbers = #tpu.dot_dimension_numbers<[1], [0], [0], [1], [0, 0, 1, 1], [], []>} : vector<16x64xf32>, vector<64x128xf32>, vector<16x128xf32> -> vector<16x128xf32>
    %c0_10 = arith.constant 0 : index
    %c0_11 = arith.constant 0 : index
    %11 = vector.load %arg3[%c0_10, %c0_11] : memref<1x128xf32, #tpu.memory_space<vmem>>, vector<1x128xf32>
    %12 = vector.broadcast %11 : vector<1x128xf32> to vector<16x128xf32>
    %13 = arith.addf %10, %12 : vector<16x128xf32>
    %14 = tpu.iota {dimensions = array<i32: 0>} : vector<16x16xi32>
    %15 = tpu.iota {dimensions = array<i32: 1>} : vector<16x16xi32>
    %c1_i32 = arith.constant 1 : i32
    %16 = vector.broadcast %c1_i32 : i32 to vector<16x16xi32>
    %17 = arith.subi %14, %16 : vector<16x16xi32>
    %18 = arith.cmpi eq, %15, %17 : vector<16x16xi32>
    %19 = arith.extui %18 : vector<16x16xi1> to vector<16x16xi32>
    %20 = arith.sitofp %19 : vector<16x16xi32> to vector<16x16xf32>
    %c1_i32_12 = arith.constant 1 : i32
    %21 = vector.broadcast %c1_i32_12 : i32 to vector<16x16xi32>
    %22 = arith.addi %14, %21 : vector<16x16xi32>
    %23 = arith.cmpi eq, %15, %22 : vector<16x16xi32>
    %24 = arith.extui %23 : vector<16x16xi1> to vector<16x16xi32>
    %25 = arith.sitofp %24 : vector<16x16xi32> to vector<16x16xf32>
    %c0_13 = arith.constant 0 : index
    %c0_14 = arith.constant 0 : index
    %26 = vector.load %arg5[%c0_13, %c0_14] : memref<1x128xf32, #tpu.memory_space<vmem>>, vector<1x128xf32>
    %cst_15 = arith.constant 0.000000e+00 : f32
    %27 = vector.broadcast %cst_15 : f32 to vector<16x128xf32>
    %28 = arith.maximumf %7, %27 : vector<16x128xf32>
    %cst_16 = arith.constant 0.000000e+00 : f32
    %29 = vector.broadcast %cst_16 : f32 to vector<16x128xf32>
    %30 = arith.maximumf %13, %29 : vector<16x128xf32>
    %cst_17 = arith.constant dense<0.000000e+00> : vector<16x128xf32>
    %31 = tpu.matmul %20, %30, %cst_17 {dimension_numbers = #tpu.dot_dimension_numbers<[1], [0], [0], [1], [0, 0, 1, 1], [], []>} : vector<16x16xf32>, vector<16x128xf32>, vector<16x128xf32> -> vector<16x128xf32>
    %cst_18 = arith.constant dense<0.000000e+00> : vector<16x128xf32>
    %32 = tpu.matmul %25, %28, %cst_18 {dimension_numbers = #tpu.dot_dimension_numbers<[1], [0], [0], [1], [0, 0, 1, 1], [], []>} : vector<16x16xf32>, vector<16x128xf32>, vector<16x128xf32> -> vector<16x128xf32>
    %c0_19 = arith.constant 0 : index
    %c0_20 = arith.constant 0 : index
    %c0_21 = arith.constant 0 : index
    %33 = vector.load %arg4[%c0_19, %c0_20, %c0_21] : memref<3x128x128xf32, #tpu.memory_space<vmem>>, vector<1x128x128xf32>
    %34 = vector.shape_cast %33 : vector<1x128x128xf32> to vector<128x128xf32>
    %cst_22 = arith.constant dense<0.000000e+00> : vector<16x128xf32>
    %35 = tpu.matmul %31, %34, %cst_22 {dimension_numbers = #tpu.dot_dimension_numbers<[1], [0], [0], [1], [0, 0, 1, 1], [], []>} : vector<16x128xf32>, vector<128x128xf32>, vector<16x128xf32> -> vector<16x128xf32>
    %c1_23 = arith.constant 1 : index
    %c0_24 = arith.constant 0 : index
    %c0_25 = arith.constant 0 : index
    %36 = vector.load %arg4[%c1_23, %c0_24, %c0_25] : memref<3x128x128xf32, #tpu.memory_space<vmem>>, vector<1x128x128xf32>
    %37 = vector.shape_cast %36 : vector<1x128x128xf32> to vector<128x128xf32>
    %cst_26 = arith.constant dense<0.000000e+00> : vector<16x128xf32>
    %38 = tpu.matmul %28, %37, %cst_26 {dimension_numbers = #tpu.dot_dimension_numbers<[1], [0], [0], [1], [0, 0, 1, 1], [], []>} : vector<16x128xf32>, vector<128x128xf32>, vector<16x128xf32> -> vector<16x128xf32>
    %39 = arith.addf %35, %38 : vector<16x128xf32>
    %c2 = arith.constant 2 : index
    %c0_27 = arith.constant 0 : index
    %c0_28 = arith.constant 0 : index
    %40 = vector.load %arg4[%c2, %c0_27, %c0_28] : memref<3x128x128xf32, #tpu.memory_space<vmem>>, vector<1x128x128xf32>
    %41 = vector.shape_cast %40 : vector<1x128x128xf32> to vector<128x128xf32>
    %cst_29 = arith.constant dense<0.000000e+00> : vector<16x128xf32>
    %42 = tpu.matmul %30, %41, %cst_29 {dimension_numbers = #tpu.dot_dimension_numbers<[1], [0], [0], [1], [0, 0, 1, 1], [], []>} : vector<16x128xf32>, vector<128x128xf32>, vector<16x128xf32> -> vector<16x128xf32>
    %43 = arith.addf %39, %42 : vector<16x128xf32>
    %44 = vector.broadcast %26 : vector<1x128xf32> to vector<16x128xf32>
    %45 = arith.addf %43, %44 : vector<16x128xf32>
    %c0_30 = arith.constant 0 : index
    %c0_31 = arith.constant 0 : index
    %c0_32 = arith.constant 0 : index
    %46 = vector.load %arg4[%c0_30, %c0_31, %c0_32] : memref<3x128x128xf32, #tpu.memory_space<vmem>>, vector<1x128x128xf32>
    %47 = vector.shape_cast %46 : vector<1x128x128xf32> to vector<128x128xf32>
    %cst_33 = arith.constant dense<0.000000e+00> : vector<16x128xf32>
    %48 = tpu.matmul %28, %47, %cst_33 {dimension_numbers = #tpu.dot_dimension_numbers<[1], [0], [0], [1], [0, 0, 1, 1], [], []>} : vector<16x128xf32>, vector<128x128xf32>, vector<16x128xf32> -> vector<16x128xf32>
    %c1_34 = arith.constant 1 : index
    %c0_35 = arith.constant 0 : index
    %c0_36 = arith.constant 0 : index
    %49 = vector.load %arg4[%c1_34, %c0_35, %c0_36] : memref<3x128x128xf32, #tpu.memory_space<vmem>>, vector<1x128x128xf32>
    %50 = vector.shape_cast %49 : vector<1x128x128xf32> to vector<128x128xf32>
    %cst_37 = arith.constant dense<0.000000e+00> : vector<16x128xf32>
    %51 = tpu.matmul %30, %50, %cst_37 {dimension_numbers = #tpu.dot_dimension_numbers<[1], [0], [0], [1], [0, 0, 1, 1], [], []>} : vector<16x128xf32>, vector<128x128xf32>, vector<16x128xf32> -> vector<16x128xf32>
    %52 = arith.addf %48, %51 : vector<16x128xf32>
    %c2_38 = arith.constant 2 : index
    %c0_39 = arith.constant 0 : index
    %c0_40 = arith.constant 0 : index
    %53 = vector.load %arg4[%c2_38, %c0_39, %c0_40] : memref<3x128x128xf32, #tpu.memory_space<vmem>>, vector<1x128x128xf32>
    %54 = vector.shape_cast %53 : vector<1x128x128xf32> to vector<128x128xf32>
    %cst_41 = arith.constant dense<0.000000e+00> : vector<16x128xf32>
    %55 = tpu.matmul %32, %54, %cst_41 {dimension_numbers = #tpu.dot_dimension_numbers<[1], [0], [0], [1], [0, 0, 1, 1], [], []>} : vector<16x128xf32>, vector<128x128xf32>, vector<16x128xf32> -> vector<16x128xf32>
    %56 = arith.addf %52, %55 : vector<16x128xf32>
    %57 = vector.broadcast %26 : vector<1x128xf32> to vector<16x128xf32>
    %58 = arith.addf %56, %57 : vector<16x128xf32>
    %c0_42 = arith.constant 0 : index
    %c0_43 = arith.constant 0 : index
    %59 = vector.load %arg7[%c0_42, %c0_43] : memref<1x256xf32, #tpu.memory_space<vmem>>, vector<1x256xf32>
    %cst_44 = arith.constant 0.000000e+00 : f32
    %60 = vector.broadcast %cst_44 : f32 to vector<16x128xf32>
    %61 = arith.maximumf %45, %60 : vector<16x128xf32>
    %cst_45 = arith.constant 0.000000e+00 : f32
    %62 = vector.broadcast %cst_45 : f32 to vector<16x128xf32>
    %63 = arith.maximumf %58, %62 : vector<16x128xf32>
    %cst_46 = arith.constant dense<0.000000e+00> : vector<16x128xf32>
    %64 = tpu.matmul %20, %63, %cst_46 {dimension_numbers = #tpu.dot_dimension_numbers<[1], [0], [0], [1], [0, 0, 1, 1], [], []>} : vector<16x16xf32>, vector<16x128xf32>, vector<16x128xf32> -> vector<16x128xf32>
    %cst_47 = arith.constant dense<0.000000e+00> : vector<16x128xf32>
    %65 = tpu.matmul %25, %61, %cst_47 {dimension_numbers = #tpu.dot_dimension_numbers<[1], [0], [0], [1], [0, 0, 1, 1], [], []>} : vector<16x16xf32>, vector<16x128xf32>, vector<16x128xf32> -> vector<16x128xf32>
    %c0_48 = arith.constant 0 : index
    %c0_49 = arith.constant 0 : index
    %c0_50 = arith.constant 0 : index
    %66 = vector.load %arg6[%c0_48, %c0_49, %c0_50] : memref<3x128x256xf32, #tpu.memory_space<vmem>>, vector<1x128x256xf32>
    %67 = vector.shape_cast %66 : vector<1x128x256xf32> to vector<128x256xf32>
    %cst_51 = arith.constant dense<0.000000e+00> : vector<16x256xf32>
    %68 = tpu.matmul %64, %67, %cst_51 {dimension_numbers = #tpu.dot_dimension_numbers<[1], [0], [0], [1], [0, 0, 1, 1], [], []>} : vector<16x128xf32>, vector<128x256xf32>, vector<16x256xf32> -> vector<16x256xf32>
    %c1_52 = arith.constant 1 : index
    %c0_53 = arith.constant 0 : index
    %c0_54 = arith.constant 0 : index
    %69 = vector.load %arg6[%c1_52, %c0_53, %c0_54] : memref<3x128x256xf32, #tpu.memory_space<vmem>>, vector<1x128x256xf32>
    %70 = vector.shape_cast %69 : vector<1x128x256xf32> to vector<128x256xf32>
    %cst_55 = arith.constant dense<0.000000e+00> : vector<16x256xf32>
    %71 = tpu.matmul %61, %70, %cst_55 {dimension_numbers = #tpu.dot_dimension_numbers<[1], [0], [0], [1], [0, 0, 1, 1], [], []>} : vector<16x128xf32>, vector<128x256xf32>, vector<16x256xf32> -> vector<16x256xf32>
    %72 = arith.addf %68, %71 : vector<16x256xf32>
    %c2_56 = arith.constant 2 : index
    %c0_57 = arith.constant 0 : index
    %c0_58 = arith.constant 0 : index
    %73 = vector.load %arg6[%c2_56, %c0_57, %c0_58] : memref<3x128x256xf32, #tpu.memory_space<vmem>>, vector<1x128x256xf32>
    %74 = vector.shape_cast %73 : vector<1x128x256xf32> to vector<128x256xf32>
    %cst_59 = arith.constant dense<0.000000e+00> : vector<16x256xf32>
    %75 = tpu.matmul %63, %74, %cst_59 {dimension_numbers = #tpu.dot_dimension_numbers<[1], [0], [0], [1], [0, 0, 1, 1], [], []>} : vector<16x128xf32>, vector<128x256xf32>, vector<16x256xf32> -> vector<16x256xf32>
    %76 = arith.addf %72, %75 : vector<16x256xf32>
    %77 = vector.broadcast %59 : vector<1x256xf32> to vector<16x256xf32>
    %78 = arith.addf %76, %77 : vector<16x256xf32>
    %c0_60 = arith.constant 0 : index
    %c0_61 = arith.constant 0 : index
    %c0_62 = arith.constant 0 : index
    %79 = vector.load %arg6[%c0_60, %c0_61, %c0_62] : memref<3x128x256xf32, #tpu.memory_space<vmem>>, vector<1x128x256xf32>
    %80 = vector.shape_cast %79 : vector<1x128x256xf32> to vector<128x256xf32>
    %cst_63 = arith.constant dense<0.000000e+00> : vector<16x256xf32>
    %81 = tpu.matmul %61, %80, %cst_63 {dimension_numbers = #tpu.dot_dimension_numbers<[1], [0], [0], [1], [0, 0, 1, 1], [], []>} : vector<16x128xf32>, vector<128x256xf32>, vector<16x256xf32> -> vector<16x256xf32>
    %c1_64 = arith.constant 1 : index
    %c0_65 = arith.constant 0 : index
    %c0_66 = arith.constant 0 : index
    %82 = vector.load %arg6[%c1_64, %c0_65, %c0_66] : memref<3x128x256xf32, #tpu.memory_space<vmem>>, vector<1x128x256xf32>
    %83 = vector.shape_cast %82 : vector<1x128x256xf32> to vector<128x256xf32>
    %cst_67 = arith.constant dense<0.000000e+00> : vector<16x256xf32>
    %84 = tpu.matmul %63, %83, %cst_67 {dimension_numbers = #tpu.dot_dimension_numbers<[1], [0], [0], [1], [0, 0, 1, 1], [], []>} : vector<16x128xf32>, vector<128x256xf32>, vector<16x256xf32> -> vector<16x256xf32>
    %85 = arith.addf %81, %84 : vector<16x256xf32>
    %c2_68 = arith.constant 2 : index
    %c0_69 = arith.constant 0 : index
    %c0_70 = arith.constant 0 : index
    %86 = vector.load %arg6[%c2_68, %c0_69, %c0_70] : memref<3x128x256xf32, #tpu.memory_space<vmem>>, vector<1x128x256xf32>
    %87 = vector.shape_cast %86 : vector<1x128x256xf32> to vector<128x256xf32>
    %cst_71 = arith.constant dense<0.000000e+00> : vector<16x256xf32>
    %88 = tpu.matmul %65, %87, %cst_71 {dimension_numbers = #tpu.dot_dimension_numbers<[1], [0], [0], [1], [0, 0, 1, 1], [], []>} : vector<16x128xf32>, vector<128x256xf32>, vector<16x256xf32> -> vector<16x256xf32>
    %89 = arith.addf %85, %88 : vector<16x256xf32>
    %90 = vector.broadcast %59 : vector<1x256xf32> to vector<16x256xf32>
    %91 = arith.addf %89, %90 : vector<16x256xf32>
    %c0_72 = arith.constant 0 : index
    %c0_73 = arith.constant 0 : index
    %c0_74 = arith.constant 0 : index
    %c0_75 = arith.constant 0 : index
    %92 = vector.load %arg8[%c0_72, %c0_73, %c0_74, %c0_75] : memref<1x2x16x256xf32, #tpu.memory_space<vmem>>, vector<1x1x16x256xf32>
    %93 = vector.shape_cast %92 : vector<1x1x16x256xf32> to vector<16x256xf32>
    %94 = vector.shape_cast %78 : vector<16x256xf32> to vector<1x1x16x256xf32>
    tpu.vector_store %arg8[%c0_72, %c0_73, %c0_74, %c0_75], %94 {strides = array<i32>} : memref<1x2x16x256xf32, #tpu.memory_space<vmem>>, vector<1x1x16x256xf32>,
    %c0_76 = arith.constant 0 : index
    %c1_77 = arith.constant 1 : index
    %c0_78 = arith.constant 0 : index
    %c0_79 = arith.constant 0 : index
    %95 = vector.load %arg8[%c0_76, %c1_77, %c0_78, %c0_79] : memref<1x2x16x256xf32, #tpu.memory_space<vmem>>, vector<1x1x16x256xf32>
    %96 = vector.shape_cast %95 : vector<1x1x16x256xf32> to vector<16x256xf32>
    %97 = vector.shape_cast %91 : vector<16x256xf32> to vector<1x1x16x256xf32>
    tpu.vector_store %arg8[%c0_76, %c1_77, %c0_78, %c0_79], %97 {strides = array<i32>} : memref<1x2x16x256xf32, #tpu.memory_space<vmem>>, vector<1x1x16x256xf32>,
    return
  }
  func.func @transform_0(%arg0: i32) -> (i32, i32, i32) {
    %c0_i32 = arith.constant 0 : i32
    %c0_i32_0 = arith.constant 0 : i32
    %c0_i32_1 = arith.constant 0 : i32
    return %arg0, %c0_i32, %c0_i32_0 : i32, i32, i32
  }
  func.func @transform_1(%arg0: i32) -> (i32, i32, i32) {
    %c0_i32 = arith.constant 0 : i32
    %c0_i32_0 = arith.constant 0 : i32
    %c0_i32_1 = arith.constant 0 : i32
    %c0_i32_2 = arith.constant 0 : i32
    return %c0_i32, %c0_i32_0, %c0_i32_1 : i32, i32, i32
  }
  func.func @transform_2(%arg0: i32) -> (i32, i32) {
    %c0_i32 = arith.constant 0 : i32
    %c0_i32_0 = arith.constant 0 : i32
    %c0_i32_1 = arith.constant 0 : i32
    return %c0_i32, %c0_i32_0 : i32, i32
  }
  func.func @transform_3(%arg0: i32) -> (i32, i32, i32) {
    %c0_i32 = arith.constant 0 : i32
    %c0_i32_0 = arith.constant 0 : i32
    %c0_i32_1 = arith.constant 0 : i32
    %c0_i32_2 = arith.constant 0 : i32
    return %c0_i32, %c0_i32_0, %c0_i32_1 : i32, i32, i32
  }
  func.func @transform_4(%arg0: i32) -> (i32, i32) {
    %c0_i32 = arith.constant 0 : i32
    %c0_i32_0 = arith.constant 0 : i32
    %c0_i32_1 = arith.constant 0 : i32
    return %c0_i32, %c0_i32_0 : i32, i32
  }
  func.func @transform_5(%arg0: i32) -> (i32, i32, i32) {
    %c0_i32 = arith.constant 0 : i32
    %c0_i32_0 = arith.constant 0 : i32
    %c0_i32_1 = arith.constant 0 : i32
    %c0_i32_2 = arith.constant 0 : i32
    return %c0_i32, %c0_i32_0, %c0_i32_1 : i32, i32, i32
  }
  func.func @transform_6(%arg0: i32) -> (i32, i32) {
    %c0_i32 = arith.constant 0 : i32
    %c0_i32_0 = arith.constant 0 : i32
    %c0_i32_1 = arith.constant 0 : i32
    return %c0_i32, %c0_i32_0 : i32, i32
  }
  func.func @transform_7(%arg0: i32) -> (i32, i32, i32, i32) {
    %c0_i32 = arith.constant 0 : i32
    %c0_i32_0 = arith.constant 0 : i32
    %c0_i32_1 = arith.constant 0 : i32
    %c0_i32_2 = arith.constant 0 : i32
    return %arg0, %c0_i32, %c0_i32_0, %c0_i32_1 : i32, i32, i32, i32
  }
}

</mosaic_0001>

<bundles_post_ra>
// kernel: tile.28
= control target key start
LH: loop header
LB: loop body
LE: loop exit
PB: predicated region body
PF: predicated region fallthrough
CT: control target
= control target key end

     0   :  { %s40_s0 = inlined_call_operand.vmem [shape: f32[8], index: 0, kind: input, shape index: {}]   ;;  %s41_s1 = inlined_call_operand.vmem [shape: f32[32,8], index: 1, kind: output, shape index: {}]  }
   0x1   :  { %v4_v0 = vld [vmem:[%s40_s0] ss:$0 sm:$0xff] }
   0x2   :  { %5 = vst [vmem:[%s41_s1] sm:$0xff] %v4_v0  ;;  %12 = vst [vmem:[%s41_s1 + $0x8] sm:$0xff] %v4_v0 }
   0x3   :  { %13 = vst [vmem:[%s41_s1 + $0x10] sm:$0xff] %v4_v0  ;;  %14 = vst [vmem:[%s41_s1 + $0x18] sm:$0xff] %v4_v0 }

// kernel: tile.29
= control target key start
LH: loop header
LB: loop body
LE: loop exit
PB: predicated region body
PF: predicated region fallthrough
CT: control target
= control target key end

     0   :  { %s7_s6 = smov 3  ;;  %s21_s9 = smov 3  ;;  %vm4_vm0 = vcmask 64512   ;;  %vm11_vm1 = vcmask 1048512   ;;  %vm18_vm2 = vcmask 982912   ;;  %vm25_vm3 = vcmask 917312   ;;  %s232_s0 = inlined_call_operand.vmem [shape: f32[32,8], index: 0, kind: input, shape index: {}]   ;;  %s233_s1 = inlined_call_operand.vmem [shape: f32[1,256], index: 1, kind: output, shape index: {}]  }
   0x1   :  { %v122_v0 = vld [vmem:[%s232_s0 + $0xf] ss:$16 sm:%s7_s6]   ;;  %s153_s10 = smov 120   ;;  %v124_v1 = vld [vmem:[%s232_s0 + $0xd] ss:$16 sm:%s21_s9]   ;;  %s14_s13 = smov 3 }
   0x2   :  { %9 = vrot.lane.b32.xlu0 %v122_v0, %s153_s10  ;;  %s154_s14 = smov 104   ;;  %v123_v2 = vld [vmem:[%s232_s0 + $0xe] ss:$16 sm:%s14_s13]   ;;  %s28_s17 = smov 3  ;;  %vm32_vm4 = vcmask 851712   ;;  %vm39_vm5 = vcmask 786112  }
   0x3   :  { %23 = vrot.lane.b32.xlu1 %v124_v1, %s154_s14  ;;  %v125_v3 = vld [vmem:[%s232_s0 + $0xc] ss:$16 sm:%s28_s17]   ;;  %s35_s20 = smov 3  ;;  %s42_s21 = smov 3  ;;  %vm46_vm6 = vcmask 720512   ;;  %vm53_vm7 = vcmask 654912  }
   0x4   :  { %s155_s22 = smov 112   ;;  %s156_s23 = smov 96   ;;  %v126_v4 = vld [vmem:[%s232_s0 + $0xb] ss:$16 sm:%s35_s20]   ;;  %v127_v5 = vld [vmem:[%s232_s0 + $0xa] ss:$16 sm:%s42_s21]  }
   0x5   :  { %s49_s28 = smov 3  ;;  %s56_s29 = smov 3  ;;  %vm60_vm8 = vcmask 589312   ;;  %vm67_vm9 = vcmask 523712   ;;  %vm74_vm10 = vcmask 458112   ;;  %vm81_vm11 = vcmask 392512  }
   0x6   :  { %16 = vrot.lane.b32.xlu0 %v123_v2, %s155_s22  ;;  %s157_s30 = smov 88   ;;  %s158_s2 = smov 80   ;;  %v128_v6 = vld [vmem:[%s232_s0 + $0x9] ss:$16 sm:%s49_s28]   ;;  %vm88_vm12 = vcmask 326912   ;;  %vm95_vm13 = vcmask 261312  }
   0x7   :  { %30 = vrot.lane.b32.xlu1 %v125_v3, %s156_s23  ;;  %v129_v7 = vld [vmem:[%s232_s0 + $0x8] ss:$16 sm:%s56_s29]   ;;  %s63_s7 = smov 3  ;;  %s70_s8 = smov 3  ;;  %vm102_vm14 = vcmask 195712   ;;  %vm109_vm15 = vcmask 130112  }
   0x8   :  { %s159_s9 = smov 72   ;;  %s160_s10 = smov 64   ;;  %v130_v8 = vld [vmem:[%s232_s0 + $0x7] ss:$16 sm:%s63_s7]   ;;  %v131_v9 = vld [vmem:[%s232_s0 + $0x6] ss:$16 sm:%s70_s8]  }
   0x9   :  { %s2_s13 = smov 3  ;;  %s77_s16 = smov 3 }
   0xa   :  { %37 = vrot.lane.b32.xlu0 %v126_v4, %s157_s30  ;;  %v3_v10 = vld [vmem:[%s232_s0] ss:$16 sm:%s2_s13]   ;;  %s84_s19 = smov 3  ;;  %s161_s20 = smov 56  }
   0xb   :  { %44 = vrot.lane.b32.xlu1 %v127_v5, %s158_s2  ;;  %5 = vst.msk [vmem:[#allocation0] ss:$8 sm:$0x3] %vm4_vm0, %v3_v10   ;;  %s162_s21 = smov 48   ;;  %v132_v11 = vld [vmem:[%s232_s0 + $0x5] ss:$16 sm:%s77_s16]  }
   0xc   :  { %v133_v12 = vld [vmem:[%s232_s0 + $0x4] ss:$16 sm:%s84_s19]   ;;  %s91_s26 = smov 3  ;;  %s98_s27 = smov 3 }
   0xd   :  { %s163_s28 = smov 40   ;;  %s164_s29 = smov 32   ;;  %v134_v13 = vld [vmem:[%s232_s0 + $0x3] ss:$16 sm:%s91_s26]   ;;  %v135_v14 = vld [vmem:[%s232_s0 + $0x2] ss:$16 sm:%s98_s27]  }
   0xe   :  { %51 = vrot.lane.b32.xlu0 %v128_v6, %s159_s9  ;;  %s105_s5 = smov 3  ;;  %s165_s6 = smov 24  }
   0xf   :  { %58 = vrot.lane.b32.xlu1 %v129_v7, %s160_s10  ;;  %s166_s7 = smov 16   ;;  %v136_v15 = vld [vmem:[%s232_s0 + $0x1] ss:$16 sm:%s105_s5]   ;;  %s167_s0 = smov 8  }
  0x12   :  { %65 = vrot.lane.b32.xlu0 %v130_v8, %s161_s20 }
  0x13   :  { %72 = vrot.lane.b32.xlu1 %v131_v9, %s162_s21 }
  0x16   :  { %79 = vrot.lane.b32.xlu0 %v132_v11, %s163_s28 }
  0x17   :  { %86 = vrot.lane.b32.xlu1 %v133_v12, %s164_s29 }
  0x1a   :  { %93 = vrot.lane.b32.xlu0 %v134_v13, %s165_s6 }
  0x1b   :  { %100 = vrot.lane.b32.xlu1 %v135_v14, %s166_s7 }
  0x1e   :  { %107 = vrot.lane.b32.xlu0 %v136_v15, %s167_s0 }
  0x74   :  { %v10_v16 = vpop.permute.xlu0 %9  }
  0x75   :  { %12 = vst.msk [vmem:[#allocation0] ss:$8 sm:$0x3] %vm11_vm1, %v10_v16   ;;  %v24_v17 = vpop.permute.xlu1 %23  }
  0x78   :  { %v17_v18 = vpop.permute.xlu0 %16  }
  0x79   :  { %19 = vst.msk [vmem:[#allocation0] ss:$8 sm:$0x3] %vm18_vm2, %v17_v18   ;;  %v31_v19 = vpop.permute.xlu1 %30  }
  0x7a   :  { %26 = vst.msk [vmem:[#allocation0] ss:$8 sm:$0x3] %vm25_vm3, %v24_v17  }
  0x7b   :  { %33 = vst.msk [vmem:[#allocation0] ss:$8 sm:$0x3] %vm32_vm4, %v31_v19  }
  0x7c   :  { %v38_v20 = vpop.permute.xlu0 %37  }
  0x7d   :  { %40 = vst.msk [vmem:[#allocation0] ss:$8 sm:$0x3] %vm39_vm5, %v38_v20   ;;  %v45_v21 = vpop.permute.xlu1 %44  }
  0x7e   :  { %47 = vst.msk [vmem:[#allocation0] ss:$8 sm:$0x3] %vm46_vm6, %v45_v21  }
  0x80   :  { %v52_v22 = vpop.permute.xlu0 %51  }
  0x81   :  { %54 = vst.msk [vmem:[#allocation0] ss:$8 sm:$0x3] %vm53_vm7, %v52_v22   ;;  %v59_v23 = vpop.permute.xlu1 %58  }
  0x82   :  { %61 = vst.msk [vmem:[#allocation0] ss:$8 sm:$0x3] %vm60_vm8, %v59_v23  }
  0x84   :  { %v66_v24 = vpop.permute.xlu0 %65  }
  0x85   :  { %68 = vst.msk [vmem:[#allocation0] ss:$8 sm:$0x3] %vm67_vm9, %v66_v24   ;;  %v73_v25 = vpop.permute.xlu1 %72  }
  0x86   :  { %75 = vst.msk [vmem:[#allocation0] ss:$8 sm:$0x3] %vm74_vm10, %v73_v25  }
  0x88   :  { %v80_v26 = vpop.permute.xlu0 %79  }
  0x89   :  { %82 = vst.msk [vmem:[#allocation0] ss:$8 sm:$0x3] %vm81_vm11, %v80_v26   ;;  %v87_v27 = vpop.permute.xlu1 %86  }
  0x8a   :  { %89 = vst.msk [vmem:[#allocation0] ss:$8 sm:$0x3] %vm88_vm12, %v87_v27  }
  0x8c   :  { %v94_v28 = vpop.permute.xlu0 %93  }
  0x8d   :  { %96 = vst.msk [vmem:[#allocation0] ss:$8 sm:$0x3] %vm95_vm13, %v94_v28   ;;  %v101_v29 = vpop.permute.xlu1 %100  }
  0x8e   :  { %103 = vst.msk [vmem:[#allocation0] ss:$8 sm:$0x3] %vm102_vm14, %v101_v29  }
  0x90   :  { %v108_v30 = vpop.permute.xlu0 %107  }
  0x91   :  { %110 = vst.msk [vmem:[#allocation0] ss:$8 sm:$0x3] %vm109_vm15, %v108_v30  }
  0x98   :  { %v114_v31 = vld [vmem:[#allocation0] sm:$0x1]  ;;  %v118_v32 = vld [vmem:[#allocation0 + $0x8] sm:$0x1] }
  0x99   :  { %116 = vst [vmem:[%s233_s1] sm:$0x1] %v114_v31  ;;  %137 = vst [vmem:[%s233_s1 + $0x1] sm:$0x1] %v118_v32 }

// kernel: tile.18
= control target key start
LH: loop header
LB: loop body
LE: loop exit
PB: predicated region body
PF: predicated region fallthrough
CT: control target
= control target key end

     0   :  { %s40_s0 = inlined_call_operand.vmem [shape: f32[4], index: 0, kind: input, shape index: {}]   ;;  %s41_s1 = inlined_call_operand.vmem [shape: f32[32,4], index: 1, kind: output, shape index: {}]  }
   0x1   :  { %v4_v0 = vld [vmem:[%s40_s0] ss:$0 sm:$0xff] }
   0x2   :  { %5 = vst [vmem:[%s41_s1] sm:$0xff] %v4_v0  ;;  %12 = vst [vmem:[%s41_s1 + $0x8] sm:$0xff] %v4_v0 }
   0x3   :  { %13 = vst [vmem:[%s41_s1 + $0x10] sm:$0xff] %v4_v0  ;;  %14 = vst [vmem:[%s41_s1 + $0x18] sm:$0xff] %v4_v0 }

// kernel: tile.19
= control target key start
LH: loop header
LB: loop body
LE: loop exit
PB: predicated region body
PF: predicated region fallthrough
CT: control target
= control target key end

     0   :  { %s259_s10 = smov 124   ;;  %s260_s11 = smov 116   ;;  %vm3_vm0 = vcmask 31744   ;;  %vm9_vm1 = vcmask 1048544   ;;  %vm15_vm2 = vcmask 1015744   ;;  %vm21_vm3 = vcmask 982944   ;;  %s399_s0 = inlined_call_operand.vmem [shape: f32[32,4], index: 0, kind: input, shape index: {}]   ;;  %s400_s1 = inlined_call_operand.vmem [shape: f32[1,128], index: 1, kind: output, shape index: {}]  }
   0x1   :  { %v197_v0 = vld [vmem:[%s399_s0 + $0x1f] sm:$0x1]   ;;  %v199_v1 = vld [vmem:[%s399_s0 + $0x1d] sm:$0x1]   ;;  %v198_v2 = vld [vmem:[%s399_s0 + $0x1e] sm:$0x1]  }
   0x2   :  { %7 = vrot.lane.b32.xlu0 %v197_v0, %s259_s10  ;;  %19 = vrot.lane.b32.xlu1 %v199_v1, %s260_s11  ;;  %v200_v3 = vld [vmem:[%s399_s0 + $0x1c] sm:$0x1]   ;;  %s261_s16 = smov 120   ;;  %s262_s17 = smov 112   ;;  %v201_v4 = vld [vmem:[%s399_s0 + $0x1b] sm:$0x1]  }
   0x3   :  { %v202_v5 = vld [vmem:[%s399_s0 + $0x1a] sm:$0x1]   ;;  %s263_s22 = smov 108   ;;  %s264_s23 = smov 104   ;;  %v203_v6 = vld [vmem:[%s399_s0 + $0x19] sm:$0x1]  }
   0x4   :  { %v204_v7 = vld [vmem:[%s399_s0 + $0x18] sm:$0x1]   ;;  %s265_s28 = smov 100   ;;  %s266_s29 = smov 96   ;;  %v205_v8 = vld [vmem:[%s399_s0 + $0x17] sm:$0x1]  }
   0x5   :  { %v206_v9 = vld [vmem:[%s399_s0 + $0x16] sm:$0x1]   ;;  %v2_v10 = vld [vmem:[%s399_s0] sm:$0x1]   ;;  %s267_s7 = smov 92   ;;  %s268_s8 = smov 88  }
   0x6   :  { %13 = vrot.lane.b32.xlu0 %v198_v2, %s261_s16  ;;  %25 = vrot.lane.b32.xlu1 %v200_v3, %s262_s17  ;;  %4 = vst.msk [vmem:[#allocation0] sm:$0x1] %vm3_vm0, %v2_v10   ;;  %v207_v11 = vld [vmem:[%s399_s0 + $0x15] sm:$0x1]   ;;  %v208_v12 = vld [vmem:[%s399_s0 + $0x14] sm:$0x1]  }
   0x7   :  { %s269_s13 = smov 84   ;;  %s270_s14 = smov 80   ;;  %v209_v13 = vld [vmem:[%s399_s0 + $0x13] sm:$0x1]   ;;  %v210_v14 = vld [vmem:[%s399_s0 + $0x12] sm:$0x1]  }
   0x8   :  { %s271_s19 = smov 76   ;;  %s272_s20 = smov 72   ;;  %v211_v15 = vld [vmem:[%s399_s0 + $0x11] sm:$0x1]   ;;  %v212_v16 = vld [vmem:[%s399_s0 + $0x10] sm:$0x1]  }
   0x9   :  { %s273_s25 = smov 68   ;;  %s274_s26 = smov 64   ;;  %v213_v17 = vld [vmem:[%s399_s0 + $0xf] sm:$0x1]   ;;  %v214_v18 = vld [vmem:[%s399_s0 + $0xe] sm:$0x1]  }
   0xa   :  { %31 = vrot.lane.b32.xlu0 %v201_v4, %s263_s22  ;;  %37 = vrot.lane.b32.xlu1 %v202_v5, %s264_s23  ;;  %s275_s2 = smov 60   ;;  %s276_s3 = smov 56   ;;  %v215_v19 = vld [vmem:[%s399_s0 + $0xd] sm:$0x1]   ;;  %v216_v20 = vld [vmem:[%s399_s0 + $0xc] sm:$0x1]  }
   0xb   :  { %s278_s9 = smov 48   ;;  %v217_v21 = vld [vmem:[%s399_s0 + $0xb] sm:$0x1]   ;;  %v218_v22 = vld [vmem:[%s399_s0 + $0xa] sm:$0x1]   ;;  %s280_s15 = smov 40  }
   0xc   :  { %v219_v23 = vld [vmem:[%s399_s0 + $0x9] sm:$0x1]   ;;  %v220_v24 = vld [vmem:[%s399_s0 + $0x8] sm:$0x1]   ;;  %s282_s21 = smov 32   ;;  %s284_s27 = smov 24  }
   0xd   :  { %v221_v25 = vld [vmem:[%s399_s0 + $0x7] sm:$0x1]   ;;  %v222_v26 = vld [vmem:[%s399_s0 + $0x6] sm:$0x1]   ;;  %v223_v27 = vld [vmem:[%s399_s0 + $0x5] sm:$0x1]  }
   0xe   :  { %43 = vrot.lane.b32.xlu0 %v203_v6, %s265_s28  ;;  %49 = vrot.lane.b32.xlu1 %v204_v7, %s266_s29  ;;  %v224_v28 = vld [vmem:[%s399_s0 + $0x4] sm:$0x1]   ;;  %s286_s4 = smov 16   ;;  %v225_v29 = vld [vmem:[%s399_s0 + $0x3] sm:$0x1]   ;;  %s288_s10 = smov 8  }
   0xf   :  { %v226_v30 = vld [vmem:[%s399_s0 + $0x2] sm:$0x1]   ;;  %v227_v31 = vld [vmem:[%s399_s0 + $0x1] sm:$0x1]   ;;  %s289_s0 = smov 4   ;;  %vm27_vm4 = vcmask 950144  }
  0x10   :  { %vm33_vm5 = vcmask 917344   ;;  %vm39_vm6 = vcmask 884544   ;;  %vm45_vm7 = vcmask 851744   ;;  %vm51_vm8 = vcmask 818944  }
  0x11   :  { %vm57_vm9 = vcmask 786144   ;;  %vm63_vm10 = vcmask 753344   ;;  %vm69_vm11 = vcmask 720544   ;;  %vm75_vm12 = vcmask 687744  }
  0x12   :  { %55 = vrot.lane.b32.xlu0 %v205_v8, %s267_s7  ;;  %61 = vrot.lane.b32.xlu1 %v206_v9, %s268_s8  ;;  %s277_s8 = smov 52   ;;  %vm81_vm13 = vcmask 654944   ;;  %vm87_vm14 = vcmask 622144   ;;  %vm93_vm15 = vcmask 589344   ;;  %vm99_vm0 = vcmask 556544  }
  0x16   :  { %67 = vrot.lane.b32.xlu0 %v207_v11, %s269_s13  ;;  %73 = vrot.lane.b32.xlu1 %v208_v12, %s270_s14  ;;  %s279_s14 = smov 44  }
  0x1a   :  { %79 = vrot.lane.b32.xlu0 %v209_v13, %s271_s19  ;;  %85 = vrot.lane.b32.xlu1 %v210_v14, %s272_s20  ;;  %s281_s20 = smov 36  }
  0x1e   :  { %91 = vrot.lane.b32.xlu0 %v211_v15, %s273_s25  ;;  %97 = vrot.lane.b32.xlu1 %v212_v16, %s274_s26  ;;  %s283_s26 = smov 28  }
  0x22   :  { %103 = vrot.lane.b32.xlu0 %v213_v17, %s275_s2  ;;  %109 = vrot.lane.b32.xlu1 %v214_v18, %s276_s3  ;;  %s285_s3 = smov 20  }
  0x26   :  { %115 = vrot.lane.b32.xlu0 %v215_v19, %s277_s8  ;;  %121 = vrot.lane.b32.xlu1 %v216_v20, %s278_s9  ;;  %s287_s9 = smov 12  }
  0x2a   :  { %127 = vrot.lane.b32.xlu0 %v217_v21, %s279_s14  ;;  %133 = vrot.lane.b32.xlu1 %v218_v22, %s280_s15 }
  0x2e   :  { %139 = vrot.lane.b32.xlu0 %v219_v23, %s281_s20  ;;  %145 = vrot.lane.b32.xlu1 %v220_v24, %s282_s21 }
  0x32   :  { %151 = vrot.lane.b32.xlu0 %v221_v25, %s283_s26  ;;  %157 = vrot.lane.b32.xlu1 %v222_v26, %s284_s27 }
  0x36   :  { %163 = vrot.lane.b32.xlu0 %v223_v27, %s285_s3  ;;  %169 = vrot.lane.b32.xlu1 %v224_v28, %s286_s4 }
  0x3a   :  { %175 = vrot.lane.b32.xlu0 %v225_v29, %s287_s9  ;;  %181 = vrot.lane.b32.xlu1 %v226_v30, %s288_s10 }
  0x3e   :  { %187 = vrot.lane.b32.xlu0 %v227_v31, %s289_s0 }
  0x74   :  { %v8_v32 = vpop.permute.xlu0 %7   ;;  %v20_v33 = vpop.permute.xlu1 %19  }
  0x75   :  { %10 = vst.msk [vmem:[#allocation0] sm:$0x1] %vm9_vm1, %v8_v32   ;;  %vm105_vm1 = vcmask 523744  }
  0x78   :  { %v14_v34 = vpop.permute.xlu0 %13   ;;  %v26_v35 = vpop.permute.xlu1 %25  }
  0x79   :  { %16 = vst.msk [vmem:[#allocation0] sm:$0x1] %vm15_vm2, %v14_v34   ;;  %vm111_vm2 = vcmask 490944  }
  0x7a   :  { %22 = vst.msk [vmem:[#allocation0] sm:$0x1] %vm21_vm3, %v20_v33   ;;  %vm117_vm3 = vcmask 458144  }
  0x7b   :  { %28 = vst.msk [vmem:[#allocation0] sm:$0x1] %vm27_vm4, %v26_v35   ;;  %vm123_vm4 = vcmask 425344  }
  0x7c   :  { %v32_v36 = vpop.permute.xlu0 %31   ;;  %v38_v37 = vpop.permute.xlu1 %37  }
  0x7d   :  { %34 = vst.msk [vmem:[#allocation0] sm:$0x1] %vm33_vm5, %v32_v36   ;;  %vm129_vm5 = vcmask 392544  }
  0x7e   :  { %40 = vst.msk [vmem:[#allocation0] sm:$0x1] %vm39_vm6, %v38_v37   ;;  %vm135_vm6 = vcmask 359744  }
  0x80   :  { %v44_v38 = vpop.permute.xlu0 %43   ;;  %v50_v39 = vpop.permute.xlu1 %49  }
  0x81   :  { %46 = vst.msk [vmem:[#allocation0] sm:$0x1] %vm45_vm7, %v44_v38   ;;  %vm141_vm7 = vcmask 326944  }
  0x82   :  { %52 = vst.msk [vmem:[#allocation0] sm:$0x1] %vm51_vm8, %v50_v39   ;;  %vm147_vm8 = vcmask 294144  }
  0x84   :  { %v56_v40 = vpop.permute.xlu0 %55   ;;  %v62_v41 = vpop.permute.xlu1 %61  }
  0x85   :  { %58 = vst.msk [vmem:[#allocation0] sm:$0x1] %vm57_vm9, %v56_v40   ;;  %vm153_vm9 = vcmask 261344  }
  0x86   :  { %64 = vst.msk [vmem:[#allocation0] sm:$0x1] %vm63_vm10, %v62_v41   ;;  %vm159_vm10 = vcmask 228544  }
  0x88   :  { %v68_v42 = vpop.permute.xlu0 %67   ;;  %v74_v43 = vpop.permute.xlu1 %73  }
  0x89   :  { %70 = vst.msk [vmem:[#allocation0] sm:$0x1] %vm69_vm11, %v68_v42   ;;  %vm165_vm11 = vcmask 195744  }
  0x8a   :  { %76 = vst.msk [vmem:[#allocation0] sm:$0x1] %vm75_vm12, %v74_v43   ;;  %vm171_vm12 = vcmask 162944  }
  0x8c   :  { %v80_v44 = vpop.permute.xlu0 %79   ;;  %v86_v45 = vpop.permute.xlu1 %85  }
  0x8d   :  { %82 = vst.msk [vmem:[#allocation0] sm:$0x1] %vm81_vm13, %v80_v44   ;;  %vm177_vm13 = vcmask 130144  }
  0x8e   :  { %88 = vst.msk [vmem:[#allocation0] sm:$0x1] %vm87_vm14, %v86_v45   ;;  %vm183_vm14 = vcmask 97344  }
  0x90   :  { %v92_v46 = vpop.permute.xlu0 %91   ;;  %v98_v47 = vpop.permute.xlu1 %97  }
  0x91   :  { %94 = vst.msk [vmem:[#allocation0] sm:$0x1] %vm93_vm15, %v92_v46   ;;  %vm189_vm15 = vcmask 64544  }
  0x92   :  { %100 = vst.msk [vmem:[#allocation0] sm:$0x1] %vm99_vm0, %v98_v47  }
  0x94   :  { %v104_v48 = vpop.permute.xlu0 %103   ;;  %v110_v49 = vpop.permute.xlu1 %109  }
  0x95   :  { %106 = vst.msk [vmem:[#allocation0] sm:$0x1] %vm105_vm1, %v104_v48  }
  0x96   :  { %112 = vst.msk [vmem:[#allocation0] sm:$0x1] %vm111_vm2, %v110_v49  }
  0x98   :  { %v116_v50 = vpop.permute.xlu0 %115   ;;  %v122_v51 = vpop.permute.xlu1 %121  }
  0x99   :  { %118 = vst.msk [vmem:[#allocation0] sm:$0x1] %vm117_vm3, %v116_v50  }
  0x9a   :  { %124 = vst.msk [vmem:[#allocation0] sm:$0x1] %vm123_vm4, %v122_v51  }
  0x9c   :  { %v128_v52 = vpop.permute.xlu0 %127   ;;  %v134_v53 = vpop.permute.xlu1 %133  }
  0x9d   :  { %130 = vst.msk [vmem:[#allocation0] sm:$0x1] %vm129_vm5, %v128_v52  }
  0x9e   :  { %136 = vst.msk [vmem:[#allocation0] sm:$0x1] %vm135_vm6, %v134_v53  }
  0xa0   :  { %v140_v54 = vpop.permute.xlu0 %139   ;;  %v146_v55 = vpop.permute.xlu1 %145  }
  0xa1   :  { %142 = vst.msk [vmem:[#allocation0] sm:$0x1] %vm141_vm7, %v140_v54  }
  0xa2   :  { %148 = vst.msk [vmem:[#allocation0] sm:$0x1] %vm147_vm8, %v146_v55  }
  0xa4   :  { %v152_v56 = vpop.permute.xlu0 %151   ;;  %v158_v57 = vpop.permute.xlu1 %157  }
  0xa5   :  { %154 = vst.msk [vmem:[#allocation0] sm:$0x1] %vm153_vm9, %v152_v56  }
  0xa6   :  { %160 = vst.msk [vmem:[#allocation0] sm:$0x1] %vm159_vm10, %v158_v57  }
  0xa8   :  { %v164_v58 = vpop.permute.xlu0 %163   ;;  %v170_v59 = vpop.permute.xlu1 %169  }
  0xa9   :  { %166 = vst.msk [vmem:[#allocation0] sm:$0x1] %vm165_vm11, %v164_v58  }
  0xaa   :  { %172 = vst.msk [vmem:[#allocation0] sm:$0x1] %vm171_vm12, %v170_v59  }
  0xac   :  { %v176_v60 = vpop.permute.xlu0 %175   ;;  %v182_v61 = vpop.permute.xlu1 %181  }
  0xad   :  { %178 = vst.msk [vmem:[#allocation0] sm:$0x1] %vm177_vm13, %v176_v60  }
  0xae   :  { %184 = vst.msk [vmem:[#allocation0] sm:$0x1] %vm183_vm14, %v182_v61  }
  0xb0   :  { %v188_v62 = vpop.permute.xlu0 %187  }
  0xb1   :  { %190 = vst.msk [vmem:[#allocation0] sm:$0x1] %vm189_vm15, %v188_v62  }
  0xb8   :  { %v194_v63 = vld [vmem:[#allocation0] sm:$0x1] }
  0xb9   :  { %196 = vst [vmem:[%s400_s1] sm:$0x1] %v194_v63 }

// kernel: decoder_block_forward.1
= control target key start
LH: loop header
LB: loop body
LE: loop exit
PB: predicated region body
PF: predicated region fallthrough
CT: control target
= control target key end

     0   :  { %s3046_s24 = smov 0   ;;  %s3745_s0 = inlined_call_operand.vmem [shape: f32[2,16,64], index: 0, kind: input, shape index: {}]   ;;  %s3746_s1 = inlined_call_operand.vmem [shape: f32[2,64,128], index: 1, kind: input, shape index: {}]   ;;  %s3747_s2 = inlined_call_operand.vmem [shape: f32[1,128], index: 2, kind: input, shape index: {}]   ;;  %s3748_s3 = inlined_call_operand.vmem [shape: f32[3,128,128], index: 3, kind: input, shape index: {}]   ;;  %s3749_s4 = inlined_call_operand.vmem [shape: f32[1,128], index: 4, kind: input, shape index: {}]   ;;  %s3750_s5 = inlined_call_operand.vmem [shape: f32[3,128,256], index: 5, kind: input, shape index: {}]   ;;  %s3751_s6 = inlined_call_operand.vmem [shape: f32[1,256], index: 6, kind: input, shape index: {}]   ;;  %s3752_s7 = inlined_call_operand.vmem [shape: f32[2,2,16,256], index: 7, kind: output, shape index: {}]  }
   0x1 LB: > { %s1971_s25 = sadd.s32 4294967295, %s3003_s24   ;;  %p1975_p0 = scmp.ge.s32.totalorder %s3003_s24, 1  ;;  %s3003_s24 = sphi %s3046_s24, %s17_s24  }
   0x2   : > { %p237_p1 = scmp.lt.s32.totalorder %s3003_s24, 3 }
   0x4   : > { %p238_p2 = pnand %p1975_p0, %p237_p1 }
   0x5   : > { %v281_v0 = vld [vmem:[%s3746_s1] sm:$0xff] (!%p238_p2)  ;;  %v282_v1 = vld [vmem:[%s3746_s1 + $0x8] sm:$0xff] (!%p238_p2)  ;;  %p269_p3 = scmp.lt.s32.totalorder (!%p238_p2), %s1971_s25, 1  ;;  %v283_v5 = vld [vmem:[%s3746_s1 + $0x10] sm:$0xff] (!%p238_p2)  ;;  %vm296_vm0 = vcmask (!%p238_p2), 523264   ;;  %v462_v26 = vlaneseq (!%p238_p2)  ;;  %vm488_vm2 = vcmask (!%p238_p2), 130048  }
   0x6   : > { %241 = sbr.rel (%p238_p2) target bundleno = 1150 (0x47e), region = 48  ;;  %v1983_v2 = vld [vmem:[%s3746_s1 + $0x40] sm:$0xff] (!%p238_p2)  ;;  %v2532_v3 = vpack.c.bf16 (!%p238_p2), %v282_v1, %v281_v0  ;;  %v1984_v4 = vld [vmem:[%s3746_s1 + $0x48] sm:$0xff] (!%p238_p2)  ;;  %v284_v6 = vld [vmem:[%s3746_s1 + $0x18] sm:$0xff] (!%p238_p2)  ;;  %v3005_v31 = vmov (!%p238_p2), 0.0  }
   0x7   : > { %v2548_v7 = vpack.c.bf16 (!%p238_p2), %v1984_v4, %v1983_v2  ;;  %v2536_v8 = vpack.c.bf16 (!%p238_p2), %v284_v6, %v283_v5  ;;  %v1985_v9 = vld [vmem:[%s3746_s1 + $0x50] sm:$0xff] (!%p238_p2)  ;;  %v1986_v10 = vld [vmem:[%s3746_s1 + $0x58] sm:$0xff] (!%p238_p2)  ;;  %v285_v11 = vld [vmem:[%s3746_s1 + $0x20] sm:$0xff] (!%p238_p2)  ;;  %v3112_v27 = vshrl.u32 (!%p238_p2), %v462_v26, 7  ;;  %v466_v28 = vand.u32 (!%p238_p2), 127, %v462_v26 }
   0x8   : > { %2533 = vmatprep.subr.bf16.mxu0 (!%p238_p2), %v2532_v3  ;;  %v2552_v12 = vpack.c.bf16 (!%p238_p2), %v1986_v10, %v1985_v9  ;;  %v286_v13 = vld [vmem:[%s3746_s1 + $0x28] sm:$0xff] (!%p238_p2)  ;;  %v1987_v14 = vld [vmem:[%s3746_s1 + $0x60] sm:$0xff] (!%p238_p2)  ;;  %v287_v18 = vld [vmem:[%s3746_s1 + $0x30] sm:$0xff] (!%p238_p2) }
   0x9   : > { %v1988_v15 = vld [vmem:[%s3746_s1 + $0x68] sm:$0xff] (!%p238_p2)  ;;  %2549 = vmatprep.subr.bf16.mxu1 (!%p238_p2), %v2548_v7  ;;  %2535 = vmatpush3.bf16.msra.mxu0 (!%p238_p2), %v2532_v3  ;;  %v2540_v16 = vpack.c.bf16 (!%p238_p2), %v286_v13, %v285_v11  ;;  %v288_v19 = vld [vmem:[%s3746_s1 + $0x38] sm:$0xff] (!%p238_p2)  ;;  %v1989_v21 = vld [vmem:[%s3746_s1 + $0x70] sm:$0xff] (!%p238_p2)  ;;  %v1993_v29 = vadd.s32 (!%p238_p2), 4294967295, %v3112_v27  ;;  %v475_v30 = vadd.s32 (!%p238_p2), 1, %v3112_v27  ;;  %v464_v35 = vadd.s32 (!%p238_p2), 8, %v3112_v27 }
   0xa   : > { %2551 = vmatpush3.bf16.msra.mxu1 (!%p238_p2), %v2548_v7  ;;  %2537 = vmatprep.subr.bf16.mxu0 (!%p238_p2), %v2536_v8  ;;  %v2556_v17 = vpack.c.bf16 (!%p238_p2), %v1988_v15, %v1987_v14  ;;  %v1990_v22 = vld [vmem:[%s3746_s1 + $0x78] sm:$0xff] (!%p238_p2)  ;;  %v2544_v23 = vpack.c.bf16 (!%p238_p2), %v288_v19, %v287_v18  ;;  %v1980_v34 = vld [vmem:[%s3747_s2] ss:$0 sm:$0xff] (!%p238_p2)  ;;  %v2004_v48 = vld [vmem:[%s3748_s3 + $0x88] sm:$0xff] (!%p238_p2) }
   0xb   : > { %2553 = vmatprep.subr.bf16.mxu1 (!%p238_p2), %v2552_v12  ;;  %v2560_v24 = vpack.c.bf16 (!%p238_p2), %v1990_v22, %v1989_v21  ;;  %vm469_vm1 = vcmp.eq.s32.totalorder (!%p238_p2), %v466_v28, %v1993_v29  ;;  %vm477_vm3 = vcmp.eq.s32.totalorder (!%p238_p2), %v466_v28, %v475_v30  ;;  %v476_v43 = vadd.s32 (!%p238_p2), 1, %v464_v35  ;;  %v2003_v47 = vld [vmem:[%s3748_s3 + $0x80] sm:$0xff] (!%p238_p2)  ;;  %v2005_v55 = vld [vmem:[%s3748_s3 + $0x90] sm:$0xff] (!%p238_p2)  ;;  %v2006_v56 = vld [vmem:[%s3748_s3 + $0x98] sm:$0xff] (!%p238_p2) }
   0xc   : > { %v3117_v32 = vsel (!%p238_p2), %vm469_vm1, 1.0, %v3005_v31  ;;  %v3120_v33 = vsel (!%p238_p2), %vm477_vm3, 1.0, %v3005_v31  ;;  %v1994_v46 = vadd.s32 (!%p238_p2), 4294967295, %v464_v35  ;;  %v2572_v53 = vpack.c.bf16 (!%p238_p2), %v2004_v48, %v2003_v47  ;;  %v2007_v60 = vld [vmem:[%s3748_s3 + $0xa0] sm:$0xff] (!%p238_p2)  ;;  %v2008_v61 = vld [vmem:[%s3748_s3 + $0xa8] sm:$0xff] (!%p238_p2)  ;;  %v2009_v63 = vld [vmem:[%s3748_s3 + $0xb0] sm:$0xff] (!%p238_p2) }
   0xd   : > { %s3754_s25 = smov (!%p269_p3, %s1971_s25), 1  ;;  %2539 = vmatpush3.bf16.msra.mxu0 %v2536_v8  ;;  %vm478_vm4 = vcmp.eq.s32.totalorder %v466_v28, %v476_v43  ;;  %v2576_v59 = vpack.c.bf16 %v2006_v56, %v2005_v55  ;;  %v2580_v62 = vpack.c.bf16 %v2008_v61, %v2007_v60  ;;  %v2010_v0 = vld [vmem:[%s3748_s3 + $0xb8] sm:$0xff]  ;;  %v2011_v2 = vld [vmem:[%s3748_s3 + $0xc0] sm:$0xff]  ;;  %v2012_v3 = vld [vmem:[%s3748_s3 + $0xc8] sm:$0xff] }
   0xe   : > { %s2110_s29 = sshll.u32 %s3754_s25, 4  ;;  %2555 = vmatpush3.bf16.msra.mxu1 %v2552_v12  ;;  %2541 = vmatprep.subr.bf16.mxu0 %v2540_v16  ;;  %vm470_vm5 = vcmp.eq.s32.totalorder %v466_v28, %v1994_v46  ;;  %v3155_v57 = vsel %vm478_vm4, 1.0, %v3005_v31  ;;  %v2584_v1 = vpack.c.bf16 %v2010_v0, %v2009_v63  ;;  %v2588_v4 = vpack.c.bf16 %v2012_v3, %v2011_v2  ;;  %v2013_v5 = vld [vmem:[%s3748_s3 + $0xd0] sm:$0xff]  ;;  %v2014_v6 = vld [vmem:[%s3748_s3 + $0xd8] sm:$0xff]  ;;  %v2015_v8 = vld [vmem:[%s3748_s3 + $0xe0] sm:$0xff]  ;;  %s2111_s18 = sshll.u32 %s3754_s25, 6 }
   0xf   : > { %s273_s9 = scalar_lea.vmem %s3745_s0, %s2110_s29  ;;  %2557 = vmatprep.subr.bf16.mxu1 %v2556_v17  ;;  %v3158_v58 = vsel %vm470_vm5, 1.0, %v3005_v31  ;;  %v2592_v7 = vpack.c.bf16 %v2014_v6, %v2013_v5  ;;  %v2016_v9 = vld [vmem:[%s3748_s3 + $0xe8] sm:$0xff]  ;;  %v2017_v11 = vld [vmem:[%s3748_s3 + $0xf0] sm:$0xff]  ;;  %v2018_v12 = vld [vmem:[%s3748_s3 + $0xf8] sm:$0xff]  ;;  %s278_s21 = scalar_lea.vmem %s3752_s7, %s2111_s18 }
  0x10   : > { %v279_v20 = vld [vmem:[%s273_s9] sm:$0xff]  ;;  %v280_v25 = vld [vmem:[%s273_s9 + $0x8] sm:$0xff]  ;;  %v2596_v10 = vpack.c.bf16 %v2016_v9, %v2015_v8  ;;  %v2600_v13 = vpack.c.bf16 %v2018_v12, %v2017_v11  ;;  %v654_v18 = vld [vmem:[%s3748_s3 + $0x18] sm:$0xff] }
  0x11   : > { %2272 = vmatprep.mubr.msk.f32.mxu0 %vm296_vm0, %v279_v20  ;;  %2291 = vmatprep.mubr.msk.f32.mxu1 %vm296_vm0, %v279_v20  ;;  %v651_v14 = vld [vmem:[%s3748_s3] sm:$0xff]  ;;  %v652_v15 = vld [vmem:[%s3748_s3 + $0x8] sm:$0xff]  ;;  %v661_v30 = vld [vmem:[%s3748_s3 + $0x50] sm:$0xff] }
  0x12   : > { %2543 = vmatpush3.bf16.msra.mxu0 %v2540_v16  ;;  %2559 = vmatpush3.bf16.msra.mxu1 %v2556_v17  ;;  %v2604_v16 = vpack.c.bf16 %v652_v15, %v651_v14  ;;  %v653_v17 = vld [vmem:[%s3748_s3 + $0x10] sm:$0xff]  ;;  %v655_v20 = vld [vmem:[%s3748_s3 + $0x20] sm:$0xff]  ;;  %v656_v21 = vld [vmem:[%s3748_s3 + $0x28] sm:$0xff] }
  0x13   : > { %2545 = vmatprep.subr.bf16.mxu0 %v2544_v23  ;;  %2561 = vmatprep.subr.bf16.mxu1 %v2560_v24  ;;  %v2608_v19 = vpack.c.bf16 %v654_v18, %v653_v17  ;;  %v2612_v22 = vpack.c.bf16 %v656_v21, %v655_v20  ;;  %v659_v26 = vld [vmem:[%s3748_s3 + $0x40] sm:$0xff]  ;;  %v660_v28 = vld [vmem:[%s3748_s3 + $0x48] sm:$0xff]  ;;  %v2021_v46 = vld [vmem:[%s3748_s3 + $0x110] sm:$0xff] }
  0x14   : > { %v2620_v29 = vpack.c.bf16 %v660_v28, %v659_v26  ;;  %v2020_v43 = vld [vmem:[%s3748_s3 + $0x108] sm:$0xff]  ;;  %v2022_v47 = vld [vmem:[%s3748_s3 + $0x118] sm:$0xff]  ;;  %v2029_v61 = vld [vmem:[%s3748_s3 + $0x150] sm:$0xff] }
  0x15   : > { %v2640_v48 = vpack.c.bf16 %v2022_v47, %v2021_v46  ;;  %v2026_v55 = vld [vmem:[%s3748_s3 + $0x138] sm:$0xff]  ;;  %v2031_v0 = vld [vmem:[%s3748_s3 + $0x160] sm:$0xff]  ;;  %v2033_v3 = vld [vmem:[%s3748_s3 + $0x170] sm:$0xff] }
  0x16   : > { %2547 = vmatpush3.bf16.msra.mxu0 %v2544_v23  ;;  %2563 = vmatpush3.bf16.msra.mxu1 %v2560_v24  ;;  %v657_v23 = vld [vmem:[%s3748_s3 + $0x30] sm:$0xff]  ;;  %v658_v24 = vld [vmem:[%s3748_s3 + $0x38] sm:$0xff]  ;;  %v2040_v17 = vld [vmem:[%s3750_s5 + $0x100] sm:$0xff] }
  0x17   : > { %v2042_v18 = vld [vmem:[%s3750_s5 + $0x110] sm:$0xff]  ;;  %v2047_v20 = vld [vmem:[%s3750_s5 + $0x138] sm:$0xff]  ;;  %v2061_v47 = vld [vmem:[%s3750_s5 + $0x1a8] sm:$0xff] }
  0x18   : > { %v3341_v21 = vpack.c.bf16 %v2042_v18, %v2040_v17  ;;  %v2051_v26 = vld [vmem:[%s3750_s5 + $0x158] sm:$0xff]  ;;  %v2058_v46 = vld [vmem:[%s3750_s5 + $0x190] sm:$0xff] }
  0x19   : > { %2273 = vmatmul.mubr.msk.f32.vlgmr.msra.gmra.mrb[0].mxu0 %vm296_vm0, %v280_v25  ;;  %2292 = vmatmul.mubr.msk.f32.vlgmr.msra.gmra.mrb[0].mxu1 %vm296_vm0, %v280_v25  ;;  %v2616_v25 = vpack.c.bf16 %v658_v24, %v657_v23  ;;  %v2044_v23 = vld [vmem:[%s3750_s5 + $0x120] sm:$0xff]  ;;  %v2046_v24 = vld [vmem:[%s3750_s5 + $0x130] sm:$0xff]  ;;  %v1327_v17 = vld [vmem:[%s3750_s5 + $0x38] sm:$0xff] }
  0x1a   : > { %2298 = vmatprep.mubr.msk.f32.mxu0 %vm488_vm2, %v3117_v32  ;;  %2305 = vmatprep.mubr.msk.f32.mxu1 %vm488_vm2, %v3120_v33  ;;  %v3361_v28 = vpack.c.bf16 %v2046_v24, %v2044_v23  ;;  %v1328_v24 = vld [vmem:[%s3750_s5 + $0x40] sm:$0xff] }
  0xec   : > { %v2274_v36 = vpop.f32.mrb[0].mxu0  ;;  %v2293_v38 = vpop.f32.mrb[0].mxu1 }
  0xed   : > { %v375_v37 = vadd.f32 %v2274_v36, %v1980_v34  ;;  %v369_v39 = vpop.f32.mrb[1].mxu0  ;;  %v459_v40 = vadd.f32 %v2293_v38, %v1980_v34  ;;  %v453_v42 = vpop.f32.mrb[1].mxu1  ;;  %v663_v36 = vld [vmem:[%s3748_s3 + $0x60] sm:$0xff] }
  0xee   : > { %v370_v41 = vadd.f32 %v1980_v34, %v369_v39  ;;  %v454_v45 = vadd.f32 %v1980_v34, %v453_v42  ;;  %v662_v34 = vld [vmem:[%s3748_s3 + $0x58] sm:$0xff]  ;;  %v665_v39 = vld [vmem:[%s3748_s3 + $0x70] sm:$0xff]  ;;  %v2019_v42 = vld [vmem:[%s3748_s3 + $0x100] sm:$0xff] }
  0xef   : > { %v3130_v44 = vmax.f32 %v375_v37, 0.0  ;;  %v3138_v49 = vmax.f32 %v459_v40, 0.0  ;;  %v2624_v35 = vpack.c.bf16 %v662_v34, %v661_v30  ;;  %v664_v37 = vld [vmem:[%s3748_s3 + $0x68] sm:$0xff]  ;;  %v666_v40 = vld [vmem:[%s3748_s3 + $0x78] sm:$0xff]  ;;  %v2048_v30 = vld [vmem:[%s3750_s5 + $0x140] sm:$0xff] }
  0xf0   : > { %v3140_v50 = vmax.f32 %v370_v41, 0.0  ;;  %v3142_v51 = vmax.f32 %v454_v45, 0.0  ;;  %v2628_v38 = vpack.c.bf16 %v664_v37, %v663_v36  ;;  %v2632_v41 = vpack.c.bf16 %v666_v40, %v665_v39  ;;  %v2050_v34 = vld [vmem:[%s3750_s5 + $0x150] sm:$0xff]  ;;  %v2057_v40 = vld [vmem:[%s3750_s5 + $0x188] sm:$0xff] }
  0xf1   : > { %v2636_v45 = vpack.c.bf16 %v2020_v43, %v2019_v42  ;;  %v3380_v36 = vpack.c.bf16 %v2050_v34, %v2048_v30  ;;  %v2054_v39 = vld [vmem:[%s3750_s5 + $0x170] sm:$0xff] }
  0xf2   : > { %v2568_v52 = vpack.c.bf16 %v3130_v44, %v3140_v50  ;;  %v2564_v54 = vpack.c.bf16 %v3138_v49, %v3142_v51 }
  0xf4   : > { %2569 = vmatprep.subr.bf16.mxu1 %v2568_v52  ;;  %2565 = vmatprep.subr.bf16.mxu0 %v2564_v54 }
  0xf5   : > { %2571 = vmatpush3.bf16.msra.mxu1 %v2568_v52  ;;  %2567 = vmatpush3.bf16.msra.mxu0 %v2564_v54  ;;  %v2024_v52 = vld [vmem:[%s3748_s3 + $0x128] sm:$0xff]  ;;  %v2025_v54 = vld [vmem:[%s3748_s3 + $0x130] sm:$0xff] }
  0xf6   : > { %2669 = vmatprep.subr.bf16.mxu1 %v2572_v53  ;;  %2573 = vmatprep.subr.bf16.mxu0 %v2572_v53  ;;  %v2648_v56 = vpack.c.bf16 %v2026_v55, %v2025_v54  ;;  %v2062_v54 = vld [vmem:[%s3750_s5 + $0x1b0] sm:$0xff]  ;;  %v2065_v55 = vld [vmem:[%s3750_s5 + $0x1c8] sm:$0xff] }
  0xf8   : > { %2306 = vmatmul.mubr.msk.f32.vlgmr.msra.gmra.mrb[2].mxu1 %vm488_vm2, %v3155_v57  ;;  %2299 = vmatmul.mubr.msk.f32.vlgmr.msra.gmra.mrb[2].mxu0 %vm488_vm2, %v3158_v58 }
  0xf9   : > { %2671 = vmatpush3.bf16.msra.mxu1 %v2572_v53  ;;  %2575 = vmatpush3.bf16.msra.mxu0 %v2572_v53 }
  0xfa   : > { %2340 = vmatprep.mubr.f32.mxu0 %v3140_v50  ;;  %2445 = vmatprep.mubr.f32.mxu1 %v3142_v51 }
  0xfb   : > { %2577 = vmatprep.subr.bf16.mxu0 %v2576_v59  ;;  %2673 = vmatprep.subr.bf16.mxu1 %v2576_v59 }
  0xfd   : > { %2675 = vmatpush3.bf16.msra.mxu1 %v2576_v59  ;;  %2579 = vmatpush3.bf16.msra.mxu0 %v2576_v59  ;;  %v2027_v59 = vld [vmem:[%s3748_s3 + $0x140] sm:$0xff] }
  0xfe   : > { %2677 = vmatprep.subr.bf16.mxu1 %v2580_v62  ;;  %2581 = vmatprep.subr.bf16.mxu0 %v2580_v62 }
 0x101   : > { %2679 = vmatpush3.bf16.msra.mxu1 %v2580_v62  ;;  %2583 = vmatpush3.bf16.msra.mxu0 %v2580_v62  ;;  %v2030_v62 = vld [vmem:[%s3748_s3 + $0x158] sm:$0xff] }
 0x102   : > { %2681 = vmatprep.subr.bf16.mxu1 %v2584_v1  ;;  %2585 = vmatprep.subr.bf16.mxu0 %v2584_v1  ;;  %v2656_v63 = vpack.c.bf16 %v2030_v62, %v2029_v61  ;;  %v2066_v61 = vld [vmem:[%s3750_s5 + $0x1d0] sm:$0xff]  ;;  %v2069_v62 = vld [vmem:[%s3750_s5 + $0x1e8] sm:$0xff] }
 0x105   : > { %2683 = vmatpush3.bf16.msra.mxu1 %v2584_v1  ;;  %2587 = vmatpush3.bf16.msra.mxu0 %v2584_v1  ;;  %v2032_v1 = vld [vmem:[%s3748_s3 + $0x168] sm:$0xff] }
 0x106   : > { %2685 = vmatprep.subr.bf16.mxu1 %v2588_v4  ;;  %2589 = vmatprep.subr.bf16.mxu0 %v2588_v4  ;;  %v2660_v2 = vpack.c.bf16 %v2032_v1, %v2031_v0 }
 0x109   : > { %2687 = vmatpush3.bf16.msra.mxu1 %v2588_v4  ;;  %2591 = vmatpush3.bf16.msra.mxu0 %v2588_v4  ;;  %v2034_v4 = vld [vmem:[%s3748_s3 + $0x178] sm:$0xff] }
 0x10a   : > { %2689 = vmatprep.subr.bf16.mxu1 %v2592_v7  ;;  %2593 = vmatprep.subr.bf16.mxu0 %v2592_v7  ;;  %v2664_v5 = vpack.c.bf16 %v2034_v4, %v2033_v3 }
 0x10d   : > { %2691 = vmatpush3.bf16.msra.mxu1 %v2592_v7  ;;  %2595 = vmatpush3.bf16.msra.mxu0 %v2592_v7 }
 0x10e   : > { %2693 = vmatprep.subr.bf16.mxu1 %v2596_v10  ;;  %2597 = vmatprep.subr.bf16.mxu0 %v2596_v10 }
 0x111   : > { %2695 = vmatpush3.bf16.msra.mxu1 %v2596_v10  ;;  %2599 = vmatpush3.bf16.msra.mxu0 %v2596_v10 }
 0x112   : > { %2697 = vmatprep.subr.bf16.mxu1 %v2600_v13  ;;  %2601 = vmatprep.subr.bf16.mxu0 %v2600_v13 }
 0x115   : > { %2699 = vmatpush3.bf16.msra.mxu1 %v2600_v13  ;;  %2603 = vmatpush3.bf16.msra.mxu0 %v2600_v13 }
 0x116   : > { %2701 = vmatprep.subr.bf16.mxu1 %v2604_v16  ;;  %2605 = vmatprep.subr.bf16.mxu0 %v2604_v16 }
 0x118   : > { %2446 = vmatmul.mubr.f32.vlgmr.msra.gmra.mrb[4].mxu1 %v3138_v49  ;;  %2341 = vmatmul.mubr.f32.vlgmr.msra.gmra.mrb[4].mxu0 %v3130_v44 }
 0x119   : > { %2703 = vmatpush3.bf16.msra.mxu1 %v2604_v16  ;;  %2480 = vmatprep.mubr.f32.mxu1 %v3140_v50  ;;  %v2023_v50 = vld [vmem:[%s3748_s3 + $0x120] sm:$0xff] }
 0x11a   : > { %2705 = vmatprep.subr.bf16.mxu1 %v2608_v19  ;;  %2607 = vmatpush3.bf16.msra.mxu0 %v2604_v16  ;;  %v2644_v53 = vpack.c.bf16 %v2024_v52, %v2023_v50 }
 0x11b   : > { %2609 = vmatprep.subr.bf16.mxu0 %v2608_v19 }
 0x11d   : > { %2707 = vmatpush3.bf16.msra.mxu1 %v2608_v19 }
 0x11e   : > { %2709 = vmatprep.subr.bf16.mxu1 %v2612_v22  ;;  %2611 = vmatpush3.bf16.msra.mxu0 %v2608_v19  ;;  %v2045_v19 = vld [vmem:[%s3750_s5 + $0x128] sm:$0xff] }
 0x11f   : > { %2613 = vmatprep.subr.bf16.mxu0 %v2612_v22 }
 0x121   : > { %2711 = vmatpush3.bf16.msra.mxu1 %v2612_v22 }
 0x122   : > { %2713 = vmatprep.subr.bf16.mxu1 %v2616_v25  ;;  %2615 = vmatpush3.bf16.msra.mxu0 %v2612_v22  ;;  %v3344_v22 = vpack.c.bf16 %v2047_v20, %v2045_v19  ;;  %v1324_v19 = vld [vmem:[%s3750_s5 + $0x20] sm:$0xff]  ;;  %v1326_v20 = vld [vmem:[%s3750_s5 + $0x30] sm:$0xff] }
 0x123   : > { %2617 = vmatprep.subr.bf16.mxu0 %v2616_v25  ;;  %v3524_v23 = vpack.c.bf16 %v1326_v20, %v1324_v19  ;;  %v2084_v20 = vld [vmem:[%s3750_s5 + $0x260] sm:$0xff] }
 0x125   : > { %2715 = vmatpush3.bf16.msra.mxu1 %v2616_v25 }
 0x126   : > { %2717 = vmatprep.subr.bf16.mxu1 %v2620_v29  ;;  %2619 = vmatpush3.bf16.msra.mxu0 %v2616_v25  ;;  %v2049_v25 = vld [vmem:[%s3750_s5 + $0x148] sm:$0xff] }
 0x127   : > { %2621 = vmatprep.subr.bf16.mxu0 %v2620_v29 }
 0x129   : > { %2719 = vmatpush3.bf16.msra.mxu1 %v2620_v29 }
 0x12a   : > { %2721 = vmatprep.subr.bf16.mxu1 %v2624_v35  ;;  %2623 = vmatpush3.bf16.msra.mxu0 %v2620_v29  ;;  %v3365_v29 = vpack.c.bf16 %v2051_v26, %v2049_v25  ;;  %v1330_v25 = vld [vmem:[%s3750_s5 + $0x50] sm:$0xff]  ;;  %v1333_v26 = vld [vmem:[%s3750_s5 + $0x68] sm:$0xff] }
 0x12b   : > { %2625 = vmatprep.subr.bf16.mxu0 %v2624_v35  ;;  %v2814_v30 = vpack.c.bf16 %v1330_v25, %v1328_v24  ;;  %v2088_v24 = vld [vmem:[%s3750_s5 + $0x280] sm:$0xff]  ;;  %v2090_v25 = vld [vmem:[%s3750_s5 + $0x290] sm:$0xff] }
 0x12d   : > { %2723 = vmatpush3.bf16.msra.mxu1 %v2624_v35 }
 0x12e   : > { %2725 = vmatprep.subr.bf16.mxu1 %v2628_v38  ;;  %2627 = vmatpush3.bf16.msra.mxu0 %v2624_v35  ;;  %v2055_v35 = vld [vmem:[%s3750_s5 + $0x178] sm:$0xff] }
 0x12f   : > { %2629 = vmatprep.subr.bf16.mxu0 %v2628_v38 }
 0x131   : > { %2727 = vmatpush3.bf16.msra.mxu1 %v2628_v38 }
 0x132   : > { %2729 = vmatprep.subr.bf16.mxu1 %v2632_v41  ;;  %2631 = vmatpush3.bf16.msra.mxu0 %v2628_v38  ;;  %v2052_v38 = vld [vmem:[%s3750_s5 + $0x160] sm:$0xff] }
 0x133   : > { %2633 = vmatprep.subr.bf16.mxu0 %v2632_v41  ;;  %v3398_v42 = vpack.c.bf16 %v2054_v39, %v2052_v38  ;;  %v1339_v38 = vld [vmem:[%s3750_s5 + $0x98] sm:$0xff] }
 0x135   : > { %2731 = vmatpush3.bf16.msra.mxu1 %v2632_v41 }
 0x136   : > { %2733 = vmatprep.subr.bf16.mxu1 %v2636_v45  ;;  %2635 = vmatpush3.bf16.msra.mxu0 %v2632_v41  ;;  %v2059_v41 = vld [vmem:[%s3750_s5 + $0x198] sm:$0xff] }
 0x137   : > { %2637 = vmatprep.subr.bf16.mxu0 %v2636_v45  ;;  %v3401_v43 = vpack.c.bf16 %v2059_v41, %v2057_v40  ;;  %v1336_v40 = vld [vmem:[%s3750_s5 + $0x80] sm:$0xff]  ;;  %v1341_v41 = vld [vmem:[%s3750_s5 + $0xa8] sm:$0xff] }
 0x138   : > { %2481 = vmatmul.mubr.f32.vlgmr.msra.gmra.mrb[4].mxu1 %v3130_v44  ;;  %v2028_v44 = vld [vmem:[%s3748_s3 + $0x148] sm:$0xff] }
 0x139   : > { %2735 = vmatpush3.bf16.msra.mxu1 %v2636_v45  ;;  %v2652_v60 = vpack.c.bf16 %v2028_v44, %v2027_v59 }
 0x13a   : > { %2737 = vmatprep.subr.bf16.mxu1 %v2640_v48 }
 0x13d   : > { %2739 = vmatpush3.bf16.msra.mxu1 %v2640_v48 }
 0x13e   : > { %2741 = vmatprep.subr.bf16.mxu1 %v2644_v53 }
 0x141   : > { %2743 = vmatpush3.bf16.msra.mxu1 %v2644_v53 }
 0x142   : > { %2745 = vmatprep.subr.bf16.mxu1 %v2648_v56 }
 0x145   : > { %2747 = vmatpush3.bf16.msra.mxu1 %v2648_v56 }
 0x146   : > { %2749 = vmatprep.subr.bf16.mxu1 %v2652_v60 }
 0x149   : > { %2751 = vmatpush3.bf16.msra.mxu1 %v2652_v60 }
 0x14a   : > { %2753 = vmatprep.subr.bf16.mxu1 %v2656_v63 }
 0x14d   : > { %2755 = vmatpush3.bf16.msra.mxu1 %v2656_v63 }
 0x14e   : > { %2757 = vmatprep.subr.bf16.mxu1 %v2660_v2 }
 0x151   : > { %2759 = vmatpush3.bf16.msra.mxu1 %v2660_v2 }
 0x152   : > { %2761 = vmatprep.subr.bf16.mxu1 %v2664_v5 }
 0x155   : > { %2763 = vmatpush3.bf16.msra.mxu1 %v2664_v5 }
 0x1cb   : > { %v2307_v6 = vpop.f32.mrb[2].mxu1  ;;  %v2300_v7 = vpop.f32.mrb[2].mxu0 }
 0x1cc   : > { %v642_v8 = vpop.f32.mrb[3].mxu1  ;;  %v561_v9 = vpop.f32.mrb[3].mxu0 }
 0x1cd   : > { %2515 = vmatprep.mubr.f32.mxu1 %v642_v8  ;;  %2375 = vmatprep.mubr.f32.mxu0 %v561_v9 }
 0x1ce   : > { %2516 = vmatmul.mubr.f32.vlgmr.msra.gmra.mrb[4].mxu1 %v2307_v6  ;;  %2376 = vmatmul.mubr.f32.vlgmr.msra.gmra.mrb[4].mxu0 %v2300_v7  ;;  %v2070_v6 = vld [vmem:[%s3750_s5 + $0x1f0] sm:$0xff] }
 0x1cf   : > { %2529 = vmatprep.mubr.msk.f32.mxu1 %vm488_vm2, %v3120_v33  ;;  %2639 = vmatpush3.bf16.msra.mxu0 %v2636_v45  ;;  %v3311_v33 = vld [vmem:[%s3749_s4] ss:$0 sm:$0xff] }
 0x1d0   : > { %2410 = vmatprep.mubr.f32.mxu0 %v3142_v51  ;;  %2641 = vmatprep.subr.bf16.mxu0 %v2640_v48  ;;  %v2056_v45 = vld [vmem:[%s3750_s5 + $0x180] sm:$0xff] }
 0x1d1   : > { %v3416_v50 = vpack.c.bf16 %v2058_v46, %v2056_v45  ;;  %v1343_v45 = vld [vmem:[%s3750_s5 + $0xb8] sm:$0xff] }
 0x1d2   : > { %v2824_v46 = vpack.c.bf16 %v1343_v45, %v1341_v41  ;;  %v2101_v41 = vld [vmem:[%s3750_s5 + $0x2e8] sm:$0xff]  ;;  %v2103_v45 = vld [vmem:[%s3750_s5 + $0x2f8] sm:$0xff] }
 0x1d3   : > { %2643 = vmatpush3.bf16.msra.mxu0 %v2640_v48  ;;  %v2063_v48 = vld [vmem:[%s3750_s5 + $0x1b8] sm:$0xff] }
 0x1d4   : > { %2645 = vmatprep.subr.bf16.mxu0 %v2644_v53  ;;  %v3419_v52 = vpack.c.bf16 %v2063_v48, %v2061_v47  ;;  %v1340_v47 = vld [vmem:[%s3750_s5 + $0xa0] sm:$0xff]  ;;  %v1345_v48 = vld [vmem:[%s3750_s5 + $0xc8] sm:$0xff] }
 0x1d7   : > { %2647 = vmatpush3.bf16.msra.mxu0 %v2644_v53  ;;  %v2060_v53 = vld [vmem:[%s3750_s5 + $0x1a0] sm:$0xff] }
 0x1d8   : > { %2649 = vmatprep.subr.bf16.mxu0 %v2648_v56  ;;  %v3434_v59 = vpack.c.bf16 %v2062_v54, %v2060_v53  ;;  %v1347_v53 = vld [vmem:[%s3750_s5 + $0xd8] sm:$0xff] }
 0x1d9   : > { %v2828_v54 = vpack.c.bf16 %v1347_v53, %v1345_v48 }
 0x1db   : > { %2651 = vmatpush3.bf16.msra.mxu0 %v2648_v56  ;;  %v2067_v56 = vld [vmem:[%s3750_s5 + $0x1d8] sm:$0xff] }
 0x1dc   : > { %2653 = vmatprep.subr.bf16.mxu0 %v2652_v60  ;;  %v3437_v44 = vpack.c.bf16 %v2067_v56, %v2065_v55  ;;  %v1344_v55 = vld [vmem:[%s3750_s5 + $0xc0] sm:$0xff]  ;;  %v1349_v56 = vld [vmem:[%s3750_s5 + $0xe8] sm:$0xff] }
 0x1df   : > { %2655 = vmatpush3.bf16.msra.mxu0 %v2652_v60  ;;  %v2064_v60 = vld [vmem:[%s3750_s5 + $0x1c0] sm:$0xff] }
 0x1e0   : > { %2657 = vmatprep.subr.bf16.mxu0 %v2656_v63  ;;  %v3452_v1 = vpack.c.bf16 %v2066_v61, %v2064_v60  ;;  %v1351_v60 = vld [vmem:[%s3750_s5 + $0xf8] sm:$0xff] }
 0x1e1   : > { %v2832_v61 = vpack.c.bf16 %v1351_v60, %v1349_v56  ;;  %v1165_v56 = vld [vmem:[%s3751_s6] sm:$0x3]  ;;  %v1660_v60 = vsub.s32 1, %v3112_v27 }
 0x1e3   : > { %2659 = vmatpush3.bf16.msra.mxu0 %v2656_v63  ;;  %v2071_v63 = vld [vmem:[%s3750_s5 + $0x1f8] sm:$0xff] }
 0x1e4   : > { %2661 = vmatprep.subr.bf16.mxu0 %v2660_v2  ;;  %v3456_v4 = vpack.c.bf16 %v2071_v63, %v2069_v62  ;;  %v1348_v62 = vld [vmem:[%s3750_s5 + $0xe0] sm:$0xff] }
 0x1e7   : > { %2663 = vmatpush3.bf16.msra.mxu0 %v2660_v2 }
 0x1e8   : > { %2665 = vmatprep.subr.bf16.mxu0 %v2664_v5 }
 0x1eb   : > { %2667 = vmatpush3.bf16.msra.mxu0 %v2664_v5  ;;  %v2068_v5 = vld [vmem:[%s3750_s5 + $0x1e0] sm:$0xff] }
 0x1ee   : > { %2411 = vmatmul.mubr.f32.vlgmr.msra.gmra.mrb[4].mxu0 %v3138_v49  ;;  %v2041_v49 = vld [vmem:[%s3750_s5 + $0x108] sm:$0xff] }
 0x1ef   : > { %2522 = vmatprep.mubr.msk.f32.mxu0 %vm488_vm2, %v3117_v32  ;;  %v2043_v32 = vld [vmem:[%s3750_s5 + $0x118] sm:$0xff] }
 0x1f0   : > { %v3327_v16 = vpack.c.bf16 %v2043_v32, %v2041_v49  ;;  %v1320_v49 = vld [vmem:[%s3750_s5] sm:$0xff]  ;;  %v1322_v32 = vld [vmem:[%s3750_s5 + $0x10] sm:$0xff] }
 0x1f1   : > { %v3502_v18 = vpack.c.bf16 %v1322_v32, %v1320_v49 }
 0x2a1   : > { %v2517_v51 = vpop.f32.mrb[4].mxu1 }
 0x2a2   : > { %v1164_v10 = vadd.f32 %v2517_v51, %v3311_v33  ;;  %v1152_v11 = vpop.f32.mrb[5].mxu1  ;;  %v3470_v51 = vpack.c.bf16 %v2070_v6, %v2068_v5  ;;  %v2077_v5 = vld [vmem:[%s3750_s5 + $0x228] sm:$0xff]  ;;  %v2079_v6 = vld [vmem:[%s3750_s5 + $0x238] sm:$0xff] }
 0x2a3   : > { %v1163_v12 = vadd.f32 %v3311_v33, %v1152_v11  ;;  %v1323_v11 = vld [vmem:[%s3750_s5 + $0x18] sm:$0xff] }
 0x2a4   : > { %v3315_v13 = vmax.f32 %v1164_v10, 0.0  ;;  %v1321_v10 = vld [vmem:[%s3750_s5 + $0x8] sm:$0xff] }
 0x2a5   : > { %v3323_v14 = vmax.f32 %v1163_v12, 0.0  ;;  %v3481_v12 = vpack.c.bf16 %v1323_v11, %v1321_v10  ;;  %v2076_v10 = vld [vmem:[%s3750_s5 + $0x220] sm:$0xff]  ;;  %v2078_v11 = vld [vmem:[%s3750_s5 + $0x230] sm:$0xff] }
 0x2a6   : > { %v2842_v49 = vpack.c.bf16 %v2078_v11, %v2076_v10 }
 0x2a7   : > { %v2764_v15 = vpack.c.bf16 %v3315_v13, %v3323_v14 }
 0x2a9   : > { %2765 = vmatprep.subr.bf16.mxu0 %v2764_v15 }
 0x2aa   : > { %2767 = vmatpush3.bf16.msra.mxu0 %v2764_v15  ;;  %v1325_v15 = vld [vmem:[%s3750_s5 + $0x28] sm:$0xff] }
 0x2ab   : > { %2773 = vmatprep.subr.bf16.mxu0 %v3327_v16 }
 0x2ad   : > { %2523 = vmatmul.mubr.msk.f32.vlgmr.msra.gmra.mrb[6].mxu0 %vm488_vm2, %v3158_v58  ;;  %v2053_v58 = vld [vmem:[%s3750_s5 + $0x168] sm:$0xff] }
 0x2ae   : > { %2775 = vmatpush1.bf16.msra.mxu0 %v3341_v21  ;;  %1449 = vmatprep.mubr.f32.mxu0 %v3005_v31  ;;  %v3383_v37 = vpack.c.bf16 %v2055_v35, %v2053_v58  ;;  %v1334_v58 = vld [vmem:[%s3750_s5 + $0x70] sm:$0xff]  ;;  %v1337_v35 = vld [vmem:[%s3750_s5 + $0x88] sm:$0xff] }
 0x2af   : > { %2777 = vmatprep.subr.bf16.mxu0 %v3344_v22  ;;  %v2820_v39 = vpack.c.bf16 %v1339_v38, %v1337_v35  ;;  %v2097_v35 = vld [vmem:[%s3750_s5 + $0x2c8] sm:$0xff]  ;;  %v2099_v38 = vld [vmem:[%s3750_s5 + $0x2d8] sm:$0xff] }
 0x2b2   : > { %2779 = vmatpush1.bf16.msra.mxu0 %v3361_v28 }
 0x2b3   : > { %2781 = vmatprep.subr.bf16.mxu0 %v3365_v29 }
 0x2b6   : > { %2783 = vmatpush1.bf16.msra.mxu0 %v3380_v36 }
 0x2b7   : > { %2785 = vmatprep.subr.bf16.mxu0 %v3383_v37 }
 0x2ba   : > { %2787 = vmatpush1.bf16.msra.mxu0 %v3398_v42 }
 0x2bb   : > { %2789 = vmatprep.subr.bf16.mxu0 %v3401_v43 }
 0x2be   : > { %2791 = vmatpush1.bf16.msra.mxu0 %v3416_v50 }
 0x2bf   : > { %2793 = vmatprep.subr.bf16.mxu0 %v3419_v52 }
 0x2c1   : > { %v2412_v0 = vpop.f32.mrb[4].mxu0 }
 0x2c2   : > { %2795 = vmatpush1.bf16.msra.mxu0 %v3434_v59  ;;  %v935_v2 = vadd.f32 %v2412_v0, %v3311_v33  ;;  %v917_v3 = vpop.f32.mrb[5].mxu0  ;;  %v2073_v0 = vld [vmem:[%s3750_s5 + $0x208] sm:$0xff] }
 0x2c3   : > { %2797 = vmatprep.subr.bf16.mxu0 %v3437_v44  ;;  %v934_v7 = vadd.f32 %v3311_v33, %v917_v3  ;;  %v2072_v3 = vld [vmem:[%s3750_s5 + $0x200] sm:$0xff] }
 0x2c4   : > { %v3465_v8 = vmax.f32 %v935_v2, 0.0 }
 0x2c5   : > { %v3467_v9 = vmax.f32 %v934_v7, 0.0 }
 0x2c6   : > { %2799 = vmatpush1.bf16.msra.mxu0 %v3452_v1 }
 0x2c7   : > { %2801 = vmatprep.subr.bf16.mxu0 %v3456_v4  ;;  %v2768_v33 = vpack.c.bf16 %v3465_v8, %v3467_v9 }
 0x2c9   : > { %2769 = vmatprep.subr.bf16.mxu1 %v2768_v33 }
 0x2ca   : > { %2803 = vmatpush1.bf16.msra.mxu0 %v3470_v51  ;;  %2771 = vmatpush3.bf16.msra.mxu1 %v2768_v33  ;;  %v2081_v33 = vld [vmem:[%s3750_s5 + $0x248] sm:$0xff] }
 0x2cb   : > { %2805 = vmatprep.subr.bf16.mxu0 %v3481_v12  ;;  %2869 = vmatprep.subr.bf16.mxu1 %v3327_v16  ;;  %v3506_v16 = vpack.c.bf16 %v1327_v17, %v1325_v15  ;;  %v2080_v15 = vld [vmem:[%s3750_s5 + $0x240] sm:$0xff]  ;;  %v2082_v17 = vld [vmem:[%s3750_s5 + $0x250] sm:$0xff] }
 0x2cd   : > { %1450 = vmatmul.mubr.f32.vlgmr.msra.gmra.mrb[8].mxu0 %v3467_v9  ;;  %2530 = vmatmul.mubr.msk.f32.vlgmr.msra.gmra.mrb[6].mxu1 %vm488_vm2, %v3155_v57  ;;  %v1329_v57 = vld [vmem:[%s3750_s5 + $0x48] sm:$0xff] }
 0x2ce   : > { %1455 = vmatprep.mubr.f32.mxu0 %v3005_v31  ;;  %2871 = vmatpush1.bf16.msra.mxu1 %v3341_v21  ;;  %v1331_v21 = vld [vmem:[%s3750_s5 + $0x58] sm:$0xff] }
 0x2cf   : > { %1732 = vmatprep.mubr.f32.mxu1 %v3005_v31  ;;  %2873 = vmatprep.subr.bf16.mxu1 %v3344_v22  ;;  %v3528_v22 = vpack.c.bf16 %v1331_v21, %v1329_v57  ;;  %v2086_v57 = vld [vmem:[%s3750_s5 + $0x270] sm:$0xff]  ;;  %v2089_v21 = vld [vmem:[%s3750_s5 + $0x288] sm:$0xff] }
 0x2d0   : > { %2807 = vmatpush1.bf16.msra.mxu0 %v3502_v18 }
 0x2d1   : > { %1456 = vmatmul.mubr.f32.gmra.mrb[10].mxu0 %v3465_v8  ;;  %2809 = vmatprep.subr.bf16.mxu0 %v3506_v16 }
 0x2d2   : > { %1526 = vmatprep.mubr.f32.mxu0 %v3005_v31  ;;  %2875 = vmatpush1.bf16.msra.mxu1 %v3361_v28  ;;  %v1335_v28 = vld [vmem:[%s3750_s5 + $0x78] sm:$0xff] }
 0x2d3   : > { %2877 = vmatprep.subr.bf16.mxu1 %v3365_v29  ;;  %v2816_v34 = vpack.c.bf16 %v1335_v28, %v1333_v26  ;;  %v1332_v29 = vld [vmem:[%s3750_s5 + $0x60] sm:$0xff]  ;;  %v2093_v26 = vld [vmem:[%s3750_s5 + $0x2a8] sm:$0xff]  ;;  %v2095_v28 = vld [vmem:[%s3750_s5 + $0x2b8] sm:$0xff] }
 0x2d4   : > { %2811 = vmatpush1.bf16.msra.mxu0 %v3524_v23 }
 0x2d5   : > { %2813 = vmatprep.subr.bf16.mxu0 %v3528_v22 }
 0x2d6   : > { %2879 = vmatpush1.bf16.msra.mxu1 %v3380_v36  ;;  %v2818_v36 = vpack.c.bf16 %v1334_v58, %v1332_v29  ;;  %v2092_v29 = vld [vmem:[%s3750_s5 + $0x2a0] sm:$0xff]  ;;  %v2094_v58 = vld [vmem:[%s3750_s5 + $0x2b0] sm:$0xff] }
 0x2d7   : > { %2881 = vmatprep.subr.bf16.mxu1 %v3383_v37  ;;  %v1338_v37 = vld [vmem:[%s3750_s5 + $0x90] sm:$0xff] }
 0x2d8   : > { %2815 = vmatpush1.bf16.msra.mxu0 %v2814_v30 }
 0x2d9   : > { %2817 = vmatprep.subr.bf16.mxu0 %v2816_v34 }
 0x2da   : > { %2883 = vmatpush1.bf16.msra.mxu1 %v3398_v42  ;;  %v2822_v42 = vpack.c.bf16 %v1338_v37, %v1336_v40  ;;  %v2096_v40 = vld [vmem:[%s3750_s5 + $0x2c0] sm:$0xff]  ;;  %v2098_v37 = vld [vmem:[%s3750_s5 + $0x2d0] sm:$0xff] }
 0x2db   : > { %2885 = vmatprep.subr.bf16.mxu1 %v3401_v43  ;;  %v1342_v43 = vld [vmem:[%s3750_s5 + $0xb0] sm:$0xff] }
 0x2dc   : > { %2819 = vmatpush1.bf16.msra.mxu0 %v2818_v36 }
 0x2dd   : > { %2821 = vmatprep.subr.bf16.mxu0 %v2820_v39 }
 0x2de   : > { %2887 = vmatpush1.bf16.msra.mxu1 %v3416_v50  ;;  %v2826_v50 = vpack.c.bf16 %v1342_v43, %v1340_v47  ;;  %v2100_v47 = vld [vmem:[%s3750_s5 + $0x2e0] sm:$0xff]  ;;  %v2102_v43 = vld [vmem:[%s3750_s5 + $0x2f0] sm:$0xff] }
 0x2df   : > { %2889 = vmatprep.subr.bf16.mxu1 %v3419_v52  ;;  %v1346_v52 = vld [vmem:[%s3750_s5 + $0xd0] sm:$0xff]  ;;  %v2866_v48 = vpack.c.bf16 %v2102_v43, %v2100_v47 }
 0x2e0   : > { %2823 = vmatpush1.bf16.msra.mxu0 %v2822_v42 }
 0x2e1   : > { %2825 = vmatprep.subr.bf16.mxu0 %v2824_v46 }
 0x2e2   : > { %2891 = vmatpush1.bf16.msra.mxu1 %v3434_v59  ;;  %v2830_v59 = vpack.c.bf16 %v1346_v52, %v1344_v55  ;;  %v1656_v52 = vsub.s32 0, %v3112_v27 }
 0x2e3   : > { %2893 = vmatprep.subr.bf16.mxu1 %v3437_v44  ;;  %v1350_v44 = vld [vmem:[%s3750_s5 + $0xf0] sm:$0xff] }
 0x2e4   : > { %2827 = vmatpush1.bf16.msra.mxu0 %v2826_v50  ;;  %v2834_v63 = vpack.c.bf16 %v1350_v44, %v1348_v62 }
 0x2e5   : > { %2829 = vmatprep.subr.bf16.mxu0 %v2828_v54 }
 0x2e6   : > { %2895 = vmatpush1.bf16.msra.mxu1 %v3452_v1  ;;  %v2075_v1 = vld [vmem:[%s3750_s5 + $0x218] sm:$0xff] }
 0x2e7   : > { %2897 = vmatprep.subr.bf16.mxu1 %v3456_v4  ;;  %v2836_v2 = vpack.c.bf16 %v2075_v1, %v2073_v0  ;;  %v2074_v4 = vld [vmem:[%s3750_s5 + $0x210] sm:$0xff] }
 0x2e8   : > { %2831 = vmatpush1.bf16.msra.mxu0 %v2830_v59  ;;  %v3637_v7 = vpack.c.bf16 %v2074_v4, %v2072_v3 }
 0x2e9   : > { %2833 = vmatprep.subr.bf16.mxu0 %v2832_v61 }
 0x2ea   : > { %2899 = vmatpush1.bf16.msra.mxu1 %v3470_v51  ;;  %v3639_v51 = vpack.c.bf16 %v2079_v6, %v2077_v5 }
 0x2eb   : > { %2901 = vmatprep.subr.bf16.mxu1 %v3481_v12  ;;  %v2083_v12 = vld [vmem:[%s3750_s5 + $0x258] sm:$0xff] }
 0x2ec   : > { %2835 = vmatpush1.bf16.msra.mxu0 %v2834_v63  ;;  %v2844_v32 = vpack.c.bf16 %v2083_v12, %v2081_v33 }
 0x2ed   : > { %1733 = vmatmul.mubr.f32.vlgmr.msra.gmra.mrb[8].mxu1 %v3323_v14  ;;  %2837 = vmatprep.subr.bf16.mxu0 %v2836_v2 }
 0x2ee   : > { %2903 = vmatpush1.bf16.msra.mxu1 %v3502_v18  ;;  %1738 = vmatprep.mubr.f32.mxu1 %v3005_v31  ;;  %v2087_v18 = vld [vmem:[%s3750_s5 + $0x278] sm:$0xff] }
 0x2ef   : > { %2905 = vmatprep.subr.bf16.mxu1 %v3506_v16  ;;  %v2846_v16 = vpack.c.bf16 %v2082_v17, %v2080_v15 }
 0x2f1   : > { %1739 = vmatmul.mubr.f32.gmra.mrb[10].mxu1 %v3315_v13 }
 0x2f2   : > { %2907 = vmatpush1.bf16.msra.mxu1 %v3524_v23  ;;  %1809 = vmatprep.mubr.f32.mxu1 %v3005_v31  ;;  %v2850_v23 = vpack.c.bf16 %v2086_v57, %v2084_v20 }
 0x2f3   : > { %2909 = vmatprep.subr.bf16.mxu1 %v3528_v22 }
 0x2f6   : > { %2911 = vmatpush1.bf16.msra.mxu1 %v2814_v30  ;;  %v2854_v30 = vpack.c.bf16 %v2090_v25, %v2088_v24 }
 0x2f7   : > { %2913 = vmatprep.subr.bf16.mxu1 %v2816_v34  ;;  %v2856_v34 = vpack.c.bf16 %v2095_v28, %v2093_v26 }
 0x2fa   : > { %2915 = vmatpush1.bf16.msra.mxu1 %v2818_v36  ;;  %v2858_v36 = vpack.c.bf16 %v2094_v58, %v2092_v29 }
 0x2fb   : > { %2917 = vmatprep.subr.bf16.mxu1 %v2820_v39  ;;  %v2860_v39 = vpack.c.bf16 %v2099_v38, %v2097_v35 }
 0x2fe   : > { %2919 = vmatpush1.bf16.msra.mxu1 %v2822_v42  ;;  %v2862_v42 = vpack.c.bf16 %v2098_v37, %v2096_v40 }
 0x2ff   : > { %2921 = vmatprep.subr.bf16.mxu1 %v2824_v46  ;;  %v2864_v46 = vpack.c.bf16 %v2103_v45, %v2101_v41 }
 0x302   : > { %2923 = vmatpush1.bf16.msra.mxu1 %v2826_v50 }
 0x303   : > { %2925 = vmatprep.subr.bf16.mxu1 %v2828_v54 }
 0x306   : > { %2927 = vmatpush1.bf16.msra.mxu1 %v2830_v59  ;;  %v1657_v59 = vrot.slane %v1165_v56, %v1656_v52 }
 0x307   : > { %2929 = vmatprep.subr.bf16.mxu1 %v2832_v61  ;;  %v1661_v61 = vrot.slane %v1165_v56, %v1660_v60 }
 0x30a   : > { %2931 = vmatpush1.bf16.msra.mxu1 %v2834_v63 }
 0x30b   : > { %2933 = vmatprep.subr.bf16.mxu1 %v2836_v2 }
 0x30d   : > { %1810 = vmatmul.mubr.f32.vlgmr.msra.gmra.mrb[8].mxu1 %v3467_v9  ;;  %v2085_v9 = vld [vmem:[%s3750_s5 + $0x268] sm:$0xff] }
 0x30e   : > { %1815 = vmatprep.mubr.f32.mxu1 %v3005_v31  ;;  %2935 = vmatpush1.bf16.msra.mxu1 %v3637_v7  ;;  %v2848_v19 = vpack.c.bf16 %v2087_v18, %v2085_v9 }
 0x30f   : > { %2937 = vmatprep.subr.bf16.mxu1 %v3639_v51 }
 0x311   : > { %1816 = vmatmul.mubr.f32.gmra.mrb[10].mxu1 %v3465_v8  ;;  %v2091_v8 = vld [vmem:[%s3750_s5 + $0x298] sm:$0xff] }
 0x312   : > { %2939 = vmatpush1.bf16.msra.mxu1 %v2842_v49  ;;  %1886 = vmatprep.mubr.f32.mxu1 %v3005_v31  ;;  %v2852_v22 = vpack.c.bf16 %v2091_v8, %v2089_v21 }
 0x313   : > { %2941 = vmatprep.subr.bf16.mxu1 %v2844_v32 }
 0x316   : > { %2943 = vmatpush1.bf16.msra.mxu1 %v2846_v16 }
 0x317   : > { %2945 = vmatprep.subr.bf16.mxu1 %v2848_v19 }
 0x31a   : > { %2947 = vmatpush1.bf16.msra.mxu1 %v2850_v23 }
 0x31b   : > { %2949 = vmatprep.subr.bf16.mxu1 %v2852_v22 }
 0x31e   : > { %2951 = vmatpush1.bf16.msra.mxu1 %v2854_v30 }
 0x31f   : > { %2953 = vmatprep.subr.bf16.mxu1 %v2856_v34 }
 0x322   : > { %2955 = vmatpush1.bf16.msra.mxu1 %v2858_v36 }
 0x323   : > { %2957 = vmatprep.subr.bf16.mxu1 %v2860_v39 }
 0x326   : > { %2959 = vmatpush1.bf16.msra.mxu1 %v2862_v42 }
 0x327   : > { %2961 = vmatprep.subr.bf16.mxu1 %v2864_v46 }
 0x32a   : > { %2963 = vmatpush1.bf16.msra.mxu1 %v2866_v48 }
 0x380   : > { %v2524_v53 = vpop.f32.mrb[6].mxu0 }
 0x381   : > { %v1236_v50 = vpop.f32.mrb[7].mxu0 }
 0x382   : > { %1527 = vmatmul.mubr.f32.vlgmr.msra.gmra.mrb[8].mxu0 %v1236_v50 }
 0x383   : > { %2839 = vmatpush1.bf16.msra.mxu0 %v3637_v7  ;;  %1532 = vmatprep.mubr.f32.mxu0 %v3005_v31 }
 0x384   : > { %2841 = vmatprep.subr.bf16.mxu0 %v3639_v51 }
 0x386   : > { %1533 = vmatmul.mubr.f32.gmra.mrb[10].mxu0 %v2524_v53 }
 0x387   : > { %2843 = vmatpush1.bf16.msra.mxu0 %v2842_v49  ;;  %1636 = vmatprep.mubr.f32.mxu0 %v3005_v31 }
 0x388   : > { %2845 = vmatprep.subr.bf16.mxu0 %v2844_v32 }
 0x38b   : > { %2847 = vmatpush1.bf16.msra.mxu0 %v2846_v16 }
 0x38c   : > { %2849 = vmatprep.subr.bf16.mxu0 %v2848_v19 }
 0x38f   : > { %2851 = vmatpush1.bf16.msra.mxu0 %v2850_v23 }
 0x390   : > { %2853 = vmatprep.subr.bf16.mxu0 %v2852_v22 }
 0x393   : > { %2855 = vmatpush1.bf16.msra.mxu0 %v2854_v30 }
 0x394   : > { %2857 = vmatprep.subr.bf16.mxu0 %v2856_v34 }
 0x397   : > { %2859 = vmatpush1.bf16.msra.mxu0 %v2858_v36 }
 0x398   : > { %2861 = vmatprep.subr.bf16.mxu0 %v2860_v39 }
 0x39b   : > { %2863 = vmatpush1.bf16.msra.mxu0 %v2862_v42 }
 0x39c   : > { %2865 = vmatprep.subr.bf16.mxu0 %v2864_v46 }
 0x39f   : > { %2867 = vmatpush1.bf16.msra.mxu0 %v2866_v48 }
 0x3a0   : > { %v2531_v54 = vpop.f32.mrb[6].mxu1 }
 0x3a1   : > { %v1311_v55 = vpop.f32.mrb[7].mxu1 }
 0x3a2   : > { %1637 = vmatmul.mubr.f32.vlgmr.msra.gmra.mrb[8].mxu0 %v3323_v14  ;;  %1887 = vmatmul.mubr.f32.vlgmr.msra.gmra.mrb[8].mxu1 %v1311_v55 }
 0x3a3   : > { %1642 = vmatprep.mubr.f32.mxu0 %v3005_v31  ;;  %1892 = vmatprep.mubr.f32.mxu1 %v3005_v31 }
 0x3a6   : > { %1643 = vmatmul.mubr.f32.gmra.mrb[10].mxu0 %v3315_v13  ;;  %1893 = vmatmul.mubr.f32.gmra.mrb[10].mxu1 %v2531_v54 }
 0x475   : > { %v1638_v14 = vpop.f32.mrb[8].mxu0  ;;  %v1888_v62 = vpop.f32.mrb[8].mxu1 }
 0x476   : > { %v1664_v31 = vadd.f32 %v1657_v59, %v1638_v14  ;;  %v1640_v13 = vpop.f32.mrb[9].mxu0  ;;  %v1903_v44 = vadd.f32 %v1888_v62, %v1657_v59  ;;  %v1890_v0 = vpop.f32.mrb[9].mxu1 }
 0x477   : > { %v1665_v63 = vadd.f32 %v1661_v61, %v1640_v13  ;;  %v1904_v1 = vadd.f32 %v1890_v0, %v1661_v61 }
 0x478   : > { %1907 = vst [vmem:[%s278_s21] sm:$0xff] %v1664_v31  ;;  %2104 = vst [vmem:[%s278_s21 + $0x20] sm:$0xff] %v1903_v44 }
 0x479   : > { %1908 = vst [vmem:[%s278_s21 + $0x8] sm:$0xff] %v1665_v63  ;;  %v1644_v2 = vpop.f32.mrb[10].mxu0  ;;  %2105 = vst [vmem:[%s278_s21 + $0x28] sm:$0xff] %v1904_v1  ;;  %v1894_v3 = vpop.f32.mrb[10].mxu1 }
 0x47a   : > { %v1666_v27 = vadd.f32 %v1657_v59, %v1644_v2  ;;  %v1646_v4 = vpop.f32.mrb[11].mxu0  ;;  %v1905_v5 = vadd.f32 %v1894_v3, %v1657_v59  ;;  %v1896_v7 = vpop.f32.mrb[11].mxu1 }
 0x47b   : > { %v1667_v6 = vadd.f32 %v1661_v61, %v1646_v4  ;;  %v1906_v51 = vadd.f32 %v1896_v7, %v1661_v61 }
 0x47c   : > { %1909 = vst [vmem:[%s278_s21 + $0x10] sm:$0xff] %v1666_v27  ;;  %2106 = vst [vmem:[%s278_s21 + $0x30] sm:$0xff] %v1905_v5 }
 0x47d   : > { %1910 = vst [vmem:[%s278_s21 + $0x18] sm:$0xff] %v1667_v6  ;;  %2107 = vst [vmem:[%s278_s21 + $0x38] sm:$0xff] %v1906_v51 }
 0x47e PF: > { %s17_s24 = sadd.s32 1, %s3003_s24  }
 0x47f   : > { %p14_p4 = scmp.ge.s32.totalorder %s17_s24, 4  }
 0x481   :  { %16 = sbr.rel (!%p14_p4) target bundleno = 1 (0x1), region = 84 }

</bundles_post_ra>
